<compile_context>
chip_gen: v6e
topology: v6e:2x2x1
jax: 0.10.0
libtpu: 0.0.40
codegen_flags: <defaults>
</compile_context>

<pallas_src>
import jax
import jax.numpy as jnp
from jax.experimental import pallas as pl
from jax.experimental.pallas import tpu as pltpu

NUM_FEATURES = 512      # hidden width fixed by the module
LANE = 128
SUBLANE = 16            # bf16-friendly sublane granule


def _round_up(x, m):
    return ((x + m - 1) // m) * m


def _make_fused_mlp_kernel(num_hidden):
    """Kernel refs layout: (x, w1, b1, [w_i, b_i]*, w_cls, b_cls, out, acc)."""
    n_in = 3 + 2 * num_hidden

    def kernel(*refs):
        x_ref, w1_ref, b1_ref = refs[0], refs[1], refs[2]
        w_cls_ref, b_cls_ref = refs[n_in - 2], refs[n_in - 1]
        o_ref = refs[n_in]
        acc_ref = refs[n_in + 1]
        k = pl.program_id(0)

        # Fold the layer-1 bias into the accumulator init (saves an add pass).
        @pl.when(k == 0)
        def _init():
            acc_ref[...] = jnp.broadcast_to(b1_ref[...], acc_ref.shape)

        # K-tiled first matmul: bf16 operands on the MXU, f32 accumulation.
        acc_ref[...] += jnp.dot(
            x_ref[...].astype(jnp.bfloat16), w1_ref[...],
            preferred_element_type=jnp.float32)

        # Finalize: ReLU, remaining hidden layers, lane-dense head.
        @pl.when(k == pl.num_programs(0) - 1)
        def _finalize():
            h = jnp.maximum(acc_ref[...], 0.0)
            for l in range(1, num_hidden):
                w_ref = refs[1 + 2 * l]
                b_ref = refs[2 + 2 * l]
                y = jnp.dot(h.astype(jnp.bfloat16), w_ref[...],
                            preferred_element_type=jnp.float32) + b_ref[...]
                h = jnp.maximum(y, 0.0)
            o_ref[...] = (
                jnp.dot(h.astype(jnp.bfloat16), w_cls_ref[...],
                        preferred_element_type=jnp.float32) + b_cls_ref[...])

    return kernel


def mlp2_forward(x, hidden_params, cls_params, *, tk=512):
    """x: NCHW [B, C, H, W] -> logits [B, num_classes] (f32).

    hidden_params: list of (w: (in, 512) bf16, b: (512,) f32)   [w is (in,out)]
    cls_params:    (w_cls: (512, num_classes) bf16, b_cls: (num_classes,) f32)
    """
    num_hidden = len(hidden_params)
    assert num_hidden >= 1
    B = x.shape[0]
    xf = x.reshape(B, -1).astype(jnp.float32)          # x.view(B, -1).float()
    F = xf.shape[1]
    NF = NUM_FEATURES
    num_classes = cls_params[0].shape[1]

    # Padded shapes: sublane-friendly batch, K-tile-aligned features,
    # lane-dense (128-multiple) classifier head.
    M_pad = _round_up(B, SUBLANE)
    tk = min(tk, _round_up(F, LANE))
    F_pad = _round_up(F, tk)
    NC_pad = _round_up(num_classes, LANE)

    x_pad = jnp.zeros((M_pad, F_pad), jnp.float32).at[:B, :F].set(xf)
    w1, b1 = hidden_params[0]
    w1_pad = jnp.zeros((F_pad, NF), jnp.bfloat16).at[:F, :].set(
        w1.astype(jnp.bfloat16))
    w_cls, b_cls = cls_params
    w_cls_pad = jnp.zeros((NF, NC_pad), jnp.bfloat16).at[:, :num_classes].set(
        w_cls.astype(jnp.bfloat16))
    b_cls_pad = jnp.zeros((1, NC_pad), jnp.float32).at[0, :num_classes].set(
        b_cls.astype(jnp.float32))

    args = [x_pad, w1_pad, b1.astype(jnp.float32).reshape(1, NF)]
    in_specs = [
        pl.BlockSpec((M_pad, tk), lambda k: (0, k)),    # x: stream K tiles
        pl.BlockSpec((tk, NF), lambda k: (k, 0)),       # w1: stream K tiles
        pl.BlockSpec((1, NF), lambda k: (0, 0)),        # b1: resident
    ]
    for w, b in hidden_params[1:]:
        args += [w.astype(jnp.bfloat16), b.astype(jnp.float32).reshape(1, NF)]
        in_specs += [
            pl.BlockSpec((NF, NF), lambda k: (0, 0)),   # resident in VMEM
            pl.BlockSpec((1, NF), lambda k: (0, 0)),
        ]
    args += [w_cls_pad, b_cls_pad]
    in_specs += [
        pl.BlockSpec((NF, NC_pad), lambda k: (0, 0)),
        pl.BlockSpec((1, NC_pad), lambda k: (0, 0)),
    ]

    out_pad = pl.pallas_call(
        _make_fused_mlp_kernel(num_hidden),
        out_shape=jax.ShapeDtypeStruct((M_pad, NC_pad), jnp.float32),
        grid=(F_pad // tk,),
        in_specs=in_specs,
        out_specs=pl.BlockSpec((M_pad, NC_pad), lambda k: (0, 0)),
        scratch_shapes=[pltpu.VMEM((M_pad, NF), jnp.float32)],
        compiler_params=pltpu.CompilerParams(
            dimension_semantics=("arbitrary",),          # K is a reduction axis
            vmem_limit_bytes=32 * 1024 * 1024),          # safe on v5e/v6e/v7x
    )(*args)
    return out_pad[:B, :num_classes]


def init_mlp2_params(key, num_inputs, num_hidden, num_classes,
                     num_features=NUM_FEATURES):
    """Deterministic init; weights stored as (in, out), bf16 for the MXU."""
    params = []
    dims = [num_inputs] + [num_features] * num_hidden
    for i in range(num_hidden):
        key, kw, kb = jax.random.split(key, 3)
        bound = 1.0 / float(dims[i]) ** 0.5
        w = jax.random.uniform(kw, (dims[i], dims[i + 1]),
                               jnp.float32, -bound, bound)
        b = jax.random.uniform(kb, (dims[i + 1],), jnp.float32, -bound, bound)
        params.append((w.astype(jnp.bfloat16), b))
    key, kw, kb = jax.random.split(key, 3)
    bound = 1.0 / float(num_features) ** 0.5
    w_cls = jax.random.uniform(kw, (num_features, num_classes),
                               jnp.float32, -bound, bound)
    b_cls = jax.random.uniform(kb, (num_classes,), jnp.float32, -bound, bound)
    return params, (w_cls.astype(jnp.bfloat16), b_cls)


if __name__ == "__main__":
    # Small shapes consistent with the module: num_inputs must equal C*H*W.
    B, C, H, W = 2, 4, 16, 16
    num_inputs = C * H * W          # 1024
    num_hidden = 2
    num_classes = 10

    key = jax.random.PRNGKey(0)
    key, kx = jax.random.split(key)
    x = jax.random.normal(kx, (B, C, H, W), jnp.float32)

    hidden_params, cls_params = init_mlp2_params(
        key, num_inputs, num_hidden, num_classes)

    out = mlp2_forward(x, hidden_params, cls_params)
    jax.block_until_ready(out)

    # Pure-JAX f32 reference (same bf16-stored weight values, f32 math).
    ref = x.reshape(B, -1).astype(jnp.float32)
    for w, b in hidden_params:
        ref = jnp.maximum(ref @ w.astype(jnp.float32) + b, 0.0)
    ref = ref @ cls_params[0].astype(jnp.float32) + cls_params[1]

    assert out.shape == (B, num_classes)
    # bf16 matmul operands (f32 accumulate) -> loosened tolerance vs f32 ref.
    assert jnp.allclose(out, ref, atol=3e-2, rtol=3e-2), (
        float(jnp.max(jnp.abs(out - ref))))

    print("KERNEL_OK")
</pallas_src>

<mosaic_0001>
module attributes {stable_mosaic.version = 11 : i64} {
  func.func @kernel(%arg0: i32, %arg1: memref<16x512xf32, #tpu.memory_space<vmem>>, %arg2: memref<512x512xbf16, #tpu.memory_space<vmem>>, %arg3: memref<1x512xf32, #tpu.memory_space<vmem>>, %arg4: memref<512x512xbf16, #tpu.memory_space<vmem>>, %arg5: memref<1x512xf32, #tpu.memory_space<vmem>>, %arg6: memref<512x128xbf16, #tpu.memory_space<vmem>>, %arg7: memref<1x128xf32, #tpu.memory_space<vmem>>, %arg8: memref<16x128xf32, #tpu.memory_space<vmem>>, %arg9: memref<16x512xf32, #tpu.memory_space<vmem>>) attributes {dimension_semantics = [#tpu.dimension_semantics<arbitrary>], iteration_bounds = array<i64: 2>, scalar_prefetch = 0 : i64, scratch_operands = 1 : i64, tpu.core_type = #tpu.core_type<tc>, window_params = [{transform_indices = @transform_0, window_bounds = array<i64: 16, 512>}, {transform_indices = @transform_1, window_bounds = array<i64: 512, 512>}, {pipeline_mode = #tpu.pipeline_mode<synchronous>, transform_indices = @transform_2, window_bounds = array<i64: 1, 512>}, {pipeline_mode = #tpu.pipeline_mode<synchronous>, transform_indices = @transform_3, window_bounds = array<i64: 512, 512>}, {pipeline_mode = #tpu.pipeline_mode<synchronous>, transform_indices = @transform_4, window_bounds = array<i64: 1, 512>}, {pipeline_mode = #tpu.pipeline_mode<synchronous>, transform_indices = @transform_5, window_bounds = array<i64: 512, 128>}, {pipeline_mode = #tpu.pipeline_mode<synchronous>, transform_indices = @transform_6, window_bounds = array<i64: 1, 128>}, {pipeline_mode = #tpu.pipeline_mode<synchronous>, transform_indices = @transform_7, window_bounds = array<i64: 16, 128>}]} {
    %c0_i32 = arith.constant 0 : i32
    %0 = arith.cmpi eq, %arg0, %c0_i32 : i32
    %1 = arith.extui %0 : i1 to i32
    %c0_i32_0 = arith.constant 0 : i32
    %2 = arith.cmpi ne, %1, %c0_i32_0 : i32
    scf.if %2 {
      %c0_9 = arith.constant 0 : index
      %c0_10 = arith.constant 0 : index
      %13 = vector.load %arg3[%c0_9, %c0_10] : memref<1x512xf32, #tpu.memory_space<vmem>>, vector<1x512xf32>
      %14 = vector.shape_cast %13 : vector<1x512xf32> to vector<1x512xf32>
      %15 = vector.broadcast %14 : vector<1x512xf32> to vector<16x512xf32>
      %c0_11 = arith.constant 0 : index
      %c0_12 = arith.constant 0 : index
      %16 = vector.load %arg9[%c0_11, %c0_12] : memref<16x512xf32, #tpu.memory_space<vmem>>, vector<16x512xf32>
      tpu.vector_store %arg9[%c0_11, %c0_12], %15 {strides = array<i32>} : memref<16x512xf32, #tpu.memory_space<vmem>>, vector<16x512xf32>,
    } else {
    }
    %c0 = arith.constant 0 : index
    %c0_1 = arith.constant 0 : index
    %3 = vector.load %arg9[%c0, %c0_1] : memref<16x512xf32, #tpu.memory_space<vmem>>, vector<16x512xf32>
    %c0_2 = arith.constant 0 : index
    %c0_3 = arith.constant 0 : index
    %4 = vector.load %arg1[%c0_2, %c0_3] : memref<16x512xf32, #tpu.memory_space<vmem>>, vector<16x512xf32>
    %5 = arith.truncf %4 : vector<16x512xf32> to vector<16x512xbf16>
    %c0_4 = arith.constant 0 : index
    %c0_5 = arith.constant 0 : index
    %6 = vector.load %arg2[%c0_4, %c0_5] : memref<512x512xbf16, #tpu.memory_space<vmem>>, vector<512x512xbf16>
    %cst = arith.constant dense<0.000000e+00> : vector<16x512xf32>
    %7 = tpu.matmul %5, %6, %cst {dimension_numbers = #tpu.dot_dimension_numbers<[1], [0], [0], [1], [0, 0, 1, 1], [], []>} : vector<16x512xbf16>, vector<512x512xbf16>, vector<16x512xf32> -> vector<16x512xf32>
    %8 = arith.addf %3, %7 : vector<16x512xf32>
    %c0_6 = arith.constant 0 : index
    %c0_7 = arith.constant 0 : index
    %9 = vector.load %arg9[%c0_6, %c0_7] : memref<16x512xf32, #tpu.memory_space<vmem>>, vector<16x512xf32>
    tpu.vector_store %arg9[%c0_6, %c0_7], %8 {strides = array<i32>} : memref<16x512xf32, #tpu.memory_space<vmem>>, vector<16x512xf32>,
    %c1_i32 = arith.constant 1 : i32
    %10 = arith.cmpi eq, %arg0, %c1_i32 : i32
    %11 = arith.extui %10 : i1 to i32
    %c0_i32_8 = arith.constant 0 : i32
    %12 = arith.cmpi ne, %11, %c0_i32_8 : i32
    scf.if %12 {
      %c0_9 = arith.constant 0 : index
      %c0_10 = arith.constant 0 : index
      %13 = vector.load %arg9[%c0_9, %c0_10] : memref<16x512xf32, #tpu.memory_space<vmem>>, vector<16x512xf32>
      %cst_11 = arith.constant 0.000000e+00 : f32
      %14 = vector.broadcast %cst_11 : f32 to vector<16x512xf32>
      %15 = arith.maximumf %13, %14 : vector<16x512xf32>
      %16 = arith.truncf %15 : vector<16x512xf32> to vector<16x512xbf16>
      %c0_12 = arith.constant 0 : index
      %c0_13 = arith.constant 0 : index
      %17 = vector.load %arg4[%c0_12, %c0_13] : memref<512x512xbf16, #tpu.memory_space<vmem>>, vector<512x512xbf16>
      %cst_14 = arith.constant dense<0.000000e+00> : vector<16x512xf32>
      %18 = tpu.matmul %16, %17, %cst_14 {dimension_numbers = #tpu.dot_dimension_numbers<[1], [0], [0], [1], [0, 0, 1, 1], [], []>} : vector<16x512xbf16>, vector<512x512xbf16>, vector<16x512xf32> -> vector<16x512xf32>
      %c0_15 = arith.constant 0 : index
      %c0_16 = arith.constant 0 : index
      %19 = vector.load %arg5[%c0_15, %c0_16] : memref<1x512xf32, #tpu.memory_space<vmem>>, vector<1x512xf32>
      %20 = vector.broadcast %19 : vector<1x512xf32> to vector<16x512xf32>
      %21 = arith.addf %18, %20 : vector<16x512xf32>
      %cst_17 = arith.constant 0.000000e+00 : f32
      %22 = vector.broadcast %cst_17 : f32 to vector<16x512xf32>
      %23 = arith.maximumf %21, %22 : vector<16x512xf32>
      %24 = arith.truncf %23 : vector<16x512xf32> to vector<16x512xbf16>
      %c0_18 = arith.constant 0 : index
      %c0_19 = arith.constant 0 : index
      %25 = vector.load %arg6[%c0_18, %c0_19] : memref<512x128xbf16, #tpu.memory_space<vmem>>, vector<512x128xbf16>
      %cst_20 = arith.constant dense<0.000000e+00> : vector<16x128xf32>
      %26 = tpu.matmul %24, %25, %cst_20 {dimension_numbers = #tpu.dot_dimension_numbers<[1], [0], [0], [1], [0, 0, 1, 1], [], []>} : vector<16x512xbf16>, vector<512x128xbf16>, vector<16x128xf32> -> vector<16x128xf32>
      %c0_21 = arith.constant 0 : index
      %c0_22 = arith.constant 0 : index
      %27 = vector.load %arg7[%c0_21, %c0_22] : memref<1x128xf32, #tpu.memory_space<vmem>>, vector<1x128xf32>
      %28 = vector.broadcast %27 : vector<1x128xf32> to vector<16x128xf32>
      %29 = arith.addf %26, %28 : vector<16x128xf32>
      %c0_23 = arith.constant 0 : index
      %c0_24 = arith.constant 0 : index
      %30 = vector.load %arg8[%c0_23, %c0_24] : memref<16x128xf32, #tpu.memory_space<vmem>>, vector<16x128xf32>
      tpu.vector_store %arg8[%c0_23, %c0_24], %29 {strides = array<i32>} : memref<16x128xf32, #tpu.memory_space<vmem>>, vector<16x128xf32>,
    } else {
    }
    return
  }
  func.func @transform_0(%arg0: i32) -> (i32, i32) {
    %c0_i32 = arith.constant 0 : i32
    %c0_i32_0 = arith.constant 0 : i32
    return %c0_i32, %arg0 : i32, i32
  }
  func.func @transform_1(%arg0: i32) -> (i32, i32) {
    %c0_i32 = arith.constant 0 : i32
    %c0_i32_0 = arith.constant 0 : i32
    return %arg0, %c0_i32 : i32, i32
  }
  func.func @transform_2(%arg0: i32) -> (i32, i32) {
    %c0_i32 = arith.constant 0 : i32
    %c0_i32_0 = arith.constant 0 : i32
    %c0_i32_1 = arith.constant 0 : i32
    return %c0_i32, %c0_i32_0 : i32, i32
  }
  func.func @transform_3(%arg0: i32) -> (i32, i32) {
    %c0_i32 = arith.constant 0 : i32
    %c0_i32_0 = arith.constant 0 : i32
    %c0_i32_1 = arith.constant 0 : i32
    return %c0_i32, %c0_i32_0 : i32, i32
  }
  func.func @transform_4(%arg0: i32) -> (i32, i32) {
    %c0_i32 = arith.constant 0 : i32
    %c0_i32_0 = arith.constant 0 : i32
    %c0_i32_1 = arith.constant 0 : i32
    return %c0_i32, %c0_i32_0 : i32, i32
  }
  func.func @transform_5(%arg0: i32) -> (i32, i32) {
    %c0_i32 = arith.constant 0 : i32
    %c0_i32_0 = arith.constant 0 : i32
    %c0_i32_1 = arith.constant 0 : i32
    return %c0_i32, %c0_i32_0 : i32, i32
  }
  func.func @transform_6(%arg0: i32) -> (i32, i32) {
    %c0_i32 = arith.constant 0 : i32
    %c0_i32_0 = arith.constant 0 : i32
    %c0_i32_1 = arith.constant 0 : i32
    return %c0_i32, %c0_i32_0 : i32, i32
  }
  func.func @transform_7(%arg0: i32) -> (i32, i32) {
    %c0_i32 = arith.constant 0 : i32
    %c0_i32_0 = arith.constant 0 : i32
    %c0_i32_1 = arith.constant 0 : i32
    return %c0_i32, %c0_i32_0 : i32, i32
  }
}

</mosaic_0001>

<bundles_post_ra>
// kernel: tpu_custom_call.1
= control target key start
LH: loop header
LB: loop body
LE: loop exit
PB: predicated region body
PF: predicated region fallthrough
CT: control target
= control target key end

     0   :  { %s4356_s0 = inlined_call_operand.hbm [shape: f32[16,1024], index: 0, kind: input, shape index: {}]   ;;  %s4357_s1 = inlined_call_operand.hbm [shape: bf16[1024,512], index: 1, kind: input, shape index: {}]   ;;  %s4358_s2 = inlined_call_operand.hbm [shape: f32[1,512], index: 2, kind: input, shape index: {}]   ;;  %s4359_s3 = inlined_call_operand.hbm [shape: bf16[512,512], index: 3, kind: input, shape index: {}]   ;;  %s4360_s4 = inlined_call_operand.vmem [shape: f32[1,512], index: 4, kind: input, shape index: {}]   ;;  %s4361_s5 = inlined_call_operand.hbm [shape: bf16[512,128], index: 5, kind: input, shape index: {}]   ;;  %s4362_s6 = inlined_call_operand.vmem [shape: f32[1,128], index: 6, kind: input, shape index: {}]   ;;  %s4363_s7 = inlined_call_operand.hbm [shape: f32[16,128], index: 7, kind: output, shape index: {}]  }
   0x1   :  { %4370 = sst [smem:[#allocation18_spill]] %s4356_s0 }
   0x2   :  { %4371 = sst [smem:[#allocation19_spill]] %s4358_s2 }
   0x3   :  { %4372 = sst [smem:[#allocation20_spill]] %s4359_s3 }
   0x4   :  { %12 = vsyncpa [#allocation4], 0 }
   0x5   :  { %14 = vsyncpa [#allocation4 + $0x1], 0 }
   0x6   :  { %15 = vsyncpa [#allocation7], 0 }
   0x7   :  { %17 = vsyncpa [#allocation7 + $0x1], 0 }
   0x8   :  { %18 = vsyncpa [#allocation10], 0 }
   0x9   :  { %19 = vsyncpa [#allocation5], 0  ;;  %s3968_s24 = smov 0   ;;  %s3970_s25 = smov 0  }
   0xa   :  { %s3972_s26 = smov 0   ;;  %s3974_s27 = smov 0  }
   0xb LB: > { %s3987_s28 = sadd.s32 4294967295, %s3911_s27   ;;  %s3990_s29 = sadd.s32 1, %s3911_s27   ;;  %s3911_s27 = sphi %s3974_s27, %s4394_s27   ;;  %s3907_s26 = sphi %s3972_s26, %s4393_s26   ;;  %s3903_s25 = sphi %s3970_s25, %s4392_s25   ;;  %s3899_s24 = sphi %s3968_s24, %s4391_s24  }
   0xc   : > { %s29_s30 = ssub.s32 %s3911_s27, %s3990_s29  ;;  %s32_s8 = sadd.s32 1, %s3907_s26 }
   0xd   : > { %p30_p0 = scmp.eq.s32.totalorder %s29_s30, 0  ;;  %p39_p1 = scmp.ne.s32.totalorder %s3907_s26, %s3903_s25 }
   0xe   : > { %p40_p2 = scmp.eq.s32.totalorder %s3911_s27, 0  ;;  %p45_p3 = scmp.ne.s32.totalorder %s3903_s25, %s3899_s24 }
   0xf   : > { %s4000_s9 = scalar_select %p30_p0, %s3907_s26, %s32_s8  }
  0x10   : > { %p4002_p4 = por %p40_p2, %p39_p1  ;;  %p4364_p5 = scmp.eq.s32.totalorder %s3987_s28, 0 }
  0x11   : > { %p2836_p6 = scmp.ge.s32.totalorder %s3911_s27, 1  ;;  %p208_p7 = scmp.lt.s32.totalorder %s3911_s27, 3 }
  0x12   : > { %p4011_p8 = por %p4364_p5, %p45_p3  ;;  %s3913_s13 = smov [#allocation8]  }
  0x13   : > { %p4016_p10 = pnand %p2836_p6, %p208_p7  ;;  %s221_s14 = sshll.u32 %s3913_s13, 4  ;;  %s222_s14 = int_to_ptr.vmem [resolvable:$true] %s221_s14 }
  0x14   : > { %s4374_s11 = scalar_select %p4011_p8, 1, 0 }
  0x15   : > { %s4375_s12 = scalar_select %p4016_p10, 1, 0 }
  0x16   : > { %p3216_p11 = pneg %p4016_p10  ;;  %p3236_p12 = scmp.lt.s32.totalorder %s3911_s27, 2 }
  0x17   : > { %s3914_s16 = smov [#allocation9]   ;;  %s3714_s19 = scalar_lea.vmem %s222_s14, 64 }
  0x18   : > { %p4025_p13 = pnand %p3216_p11, %p4364_p5  ;;  %s231_s17 = sshll.u32 %s3914_s16, 4  ;;  %s232_s17 = int_to_ptr.vmem [resolvable:$true] %s231_s17 }
  0x19   : > { %p4031_p0 = pnand %p3236_p12, %p4002_p4  ;;  %p3715_p2 = scmp.ne.s32.totalorder %s222_s14, %s3714_s19 }
  0x1a   : > { %p3705_p1 = pneg %p4025_p13  ;;  %p3722_p7 = scmp.lt.s32.totalorder %s222_s14, %s222_s14 }
  0x1b   : > { %s4377_s18 = scalar_select %p4031_p0, 1, 0 }
  0x1c   : > { %p3717_p3 = pnand %p3715_p2, %p3705_p1  ;;  %p3723_p11 = scmp.lt.s32.totalorder %s3714_s19, %s3714_s19 }
  0x1e   : > { %p3718_p6 = pneg %p3717_p3  ;;  %p3724_p9 = por %p3723_p11, %p3722_p7 }
  0x20   : > { %p3725_p5 = pnand %p3724_p9, %p3718_p6 }
  0x22   : > { %3728 = shalt.err (!%p3725_p5)
}
  0x23   : > { %s4378_s2 = sld [smem:[#allocation19_spill]]  ;;  %s3740_s22 = scalar_lea.vmem %s232_s17, 16384 }
  0x24   : > { %p3741_p4 = scmp.ne.s32.totalorder %s232_s17, %s3740_s22  ;;  %p3748_p2 = scmp.lt.s32.totalorder %s232_s17, %s232_s17 }
  0x25   : > { %p3749_p3 = scmp.lt.s32.totalorder %s3740_s22, %s3740_s22 }
  0x26   : > { %p3743_p12 = pnand %p3741_p4, %p3705_p1 }
  0x27   : > { %p3750_p10 = por %p3749_p3, %p3748_p2 }
  0x28   : > { %p3744_p8 = pneg %p3743_p12 }
  0x29   : > { %3219 = dma.hbm_to_vmem [thread:$0]  (!%p4025_p13), %s4378_s2, 64, %s222_s14, [#allocation7]  }
  0x2a   : > { %p3751_p0 = pnand %p3750_p10, %p3744_p8 }
  0x2c   : > { %3754 = shalt.err (!%p3751_p0)
}
  0x2d   : > { %s4368_s23 = smov 256   ;;  %s4369_s24 = smov 16  }
  0x2e   : > { %s4379_s3 = sld [smem:[#allocation20_spill]]  ;;  %s3917_s10 = smov [#allocation11]  }
  0x2f   : > { %s247_s13 = sshll.u32 %s3917_s10, 4  ;;  %s4057_s14 = sand.u32 1, %s3907_s26   ;;  %s248_s13 = int_to_ptr.vmem [resolvable:$true] %s247_s13 }
  0x30   : > { %s3766_s16 = scalar_lea.vmem %s248_s13, 4096  ;;  %p3774_p10 = scmp.lt.s32.totalorder %s248_s13, %s248_s13 }
  0x31   : > { %p3767_p5 = scmp.ne.s32.totalorder %s248_s13, %s3766_s16  ;;  %p3775_p0 = scmp.lt.s32.totalorder %s3766_s16, %s3766_s16 }
  0x33   : > { %p3769_p8 = pnand %p3767_p5, %p3705_p1  ;;  %p3776_p6 = por %p3775_p0, %p3774_p10 }
  0x34   : > { %3222 = dma.hbm_to_vmem [thread:$0]  (!%p4025_p13), %s4379_s3, 16384, %s232_s17, [#allocation10], %s4368_s23, %s4368_s23, %s4369_s24  }
  0x35   : > { %p3770_p9 = pneg %p3769_p8 }
  0x37   : > { %p3777_p7 = pnand %p3776_p6, %p3770_p9 }
  0x39   : > { %3780 = shalt.err (!%p3777_p7)
}
  0x3a   : > { %s3918_s19 = smov 64   ;;  %s3919_s17 = smov 4  }
  0x3b   : > { %3225 = dma.hbm_to_vmem [thread:$0]  (!%p4025_p13), %s4361_s5, 4096, %s248_s13, [#allocation10], %s3918_s19, %s3918_s19, %s3919_s17  }
  0x3c   : > { %s2841_s22 = sshll.u32 %s4057_s14, 6  ;;  %s3149_s30 = sshll.u32 %s3911_s27, 9 }
  0x3d   : > { %s4380_s0 = sld [smem:[#allocation18_spill]]  ;;  %s268_s23 = scalar_lea.vmem [#allocation3], %s2841_s22 }
  0x3e   : > { %s275_s24 = sshll.u32 %s268_s23, 4  ;;  %s265_s2 = scalar_lea.sflag [#allocation4], %s4057_s14  ;;  %s4074_s24 = int_to_ptr.vmem [resolvable:$true] %s275_s24 }
  0x3f   : > { %p4381_p11 = scmp.ne.s32.totalorder %s4377_s18, 0 }
  0x41   : > { %p3783_p4 = pneg %p4381_p11 }
  0x43   : > { %s4072_s16 = scalar_lea.hbm %s4380_s0, %s3149_s30  ;;  %s3786_s17 = scalar_lea.hbm %s4380_s0, 2048 }
  0x44   : > { %s3781_s15 = scalar_lea.hbm %s4072_s16, 1024  ;;  %p3787_p2 = scmp.lt.s32.totalorder %s4072_s16, %s4380_s0 }
  0x45   : > { %p3782_p1 = scmp.ne.s32.totalorder %s4072_s16, %s3781_s15  ;;  %p3788_p3 = scmp.lt.s32.totalorder %s3786_s17, %s3781_s15 }
  0x47   : > { %p3784_p13 = pnand %p3783_p4, %p3782_p1  ;;  %p3789_p5 = por %p3788_p3, %p3787_p2 }
  0x49   : > { %p3785_p12 = pneg %p3784_p13 }
  0x4b   : > { %p3790_p8 = pnand %p3789_p5, %p3785_p12 }
  0x4d   : > { %3793 = shalt.err (!%p3790_p8)
}
  0x4e   : > { %s3794_s23 = scalar_lea.vmem %s4074_s24, 1024  ;;  %s3920_s22 = smov [#allocation3]  }
  0x4f   : > { %p3795_p9 = scmp.ne.s32.totalorder %s4074_s24, %s3794_s23  ;;  %s3799_s30 = sshll.u32 %s3920_s22, 4  ;;  %s3800_s30 = int_to_ptr.vmem [resolvable:$false] %s3799_s30 }
  0x50   : > { %s3801_s8 = scalar_lea.vmem %s3800_s30, 2048  ;;  %p3802_p6 = scmp.lt.s32.totalorder %s4074_s24, %s3800_s30 }
  0x51   : > { %p3797_p10 = pnand %p3795_p9, %p3783_p4  ;;  %p3803_p7 = scmp.lt.s32.totalorder %s3801_s8, %s3794_s23 }
  0x53   : > { %p3798_p0 = pneg %p3797_p10  ;;  %p3804_p1 = por %p3803_p7, %p3802_p6 }
  0x55   : > { %p3805_p13 = pnand %p3804_p1, %p3798_p0 }
  0x57   : > { %3808 = shalt.err (!%p3805_p13)
}
  0x58   : > { %s3921_s10 = smov 1024   ;;  %s3922_s15 = smov 512  }
  0x59   : > { %s3923_s13 = smov 32   ;;  %s285_s19 = sand.u32 1, %s3911_s27  }
  0x5a   : > { %3229 = dma.hbm_to_vmem [thread:$0]  (!%p4381_p11), %s4072_s16, 1024, %s4074_s24, %s265_s2, %s3921_s10, %s3922_s15, %s3923_s13  }
  0x5b   : > { %s2844_s17 = sshll.u32 %s4057_s14, 10  ;;  %s3151_s20 = sshll.u32 %s3911_s27, 14 }
  0x5c   : > { %s289_s21 = scalar_lea.vmem [#allocation6], %s2844_s17  ;;  %s4109_s8 = scalar_lea.hbm %s4357_s1, %s3151_s20 }
  0x5d   : > { %s297_s23 = sshll.u32 %s289_s21, 4  ;;  %s286_s0 = scalar_lea.sflag [#allocation7], %s285_s19  ;;  %s4111_s23 = int_to_ptr.vmem [resolvable:$true] %s297_s23 }
  0x5e   : > { %s3809_s3 = scalar_lea.hbm %s4109_s8, 16384  ;;  %s3814_s24 = scalar_lea.hbm %s4357_s1, 32768 }
  0x5f   : > { %p3810_p12 = scmp.ne.s32.totalorder %s4109_s8, %s3809_s3  ;;  %p3815_p5 = scmp.lt.s32.totalorder %s4109_s8, %s4357_s1 }
  0x60   : > { %p3816_p8 = scmp.lt.s32.totalorder %s3814_s24, %s3809_s3 }
  0x61   : > { %p3812_p2 = pnand %p3810_p12, %p3783_p4 }
  0x62   : > { %p3817_p9 = por %p3816_p8, %p3815_p5 }
  0x63   : > { %p3813_p3 = pneg %p3812_p2 }
  0x65   : > { %p3818_p10 = pnand %p3817_p9, %p3813_p3 }
  0x67   : > { %3821 = shalt.err (!%p3818_p10)
}
  0x68   : > { %s3822_s10 = scalar_lea.vmem %s4111_s23, 16384  ;;  %s3924_s15 = smov [#allocation6]  }
  0x69   : > { %p3823_p0 = scmp.ne.s32.totalorder %s4111_s23, %s3822_s10  ;;  %s3827_s13 = sshll.u32 %s3924_s15, 4  ;;  %s3828_s13 = int_to_ptr.vmem [resolvable:$false] %s3827_s13 }
  0x6a   : > { %s3829_s19 = scalar_lea.vmem %s3828_s13, 32768  ;;  %p3830_p1 = scmp.lt.s32.totalorder %s4111_s23, %s3828_s13 }
  0x6b   : > { %p3825_p6 = pnand %p3823_p0, %p3783_p4  ;;  %p3831_p13 = scmp.lt.s32.totalorder %s3829_s19, %s3822_s10 }
  0x6d   : > { %p3826_p7 = pneg %p3825_p6  ;;  %p3832_p12 = por %p3831_p13, %p3830_p1 }
  0x6f   : > { %p3833_p2 = pnand %p3832_p12, %p3826_p7 }
  0x71   : > { %3836 = shalt.err (!%p3833_p2)
}
  0x72   : > { %s4382_s3 = smov 16   ;;  %s4383_s17 = smov 256  }
  0x73   : > { %3232 = dma.hbm_to_vmem [thread:$0]  (!%p4381_p11), %s4109_s8, 16384, %s4111_s23, %s286_s0, %s4383_s17, %s4383_s17, %s4382_s3  }
  0x74   : > { %p4384_p4 = scmp.ne.s32.totalorder %s4375_s12, 0 }
  0x75   : > { %s311_s20 = sand.u32 (!%p4384_p4), 1, %s3903_s25   ;;  %p4385_p3 = scmp.ne.s32.totalorder (!%p4384_p4), %s4374_s11, 0 }
  0x76   : > { %309 = sbr.rel (%p4384_p4) target bundleno = 1044 (0x414), region = 48  ;;  %s2849_s21 = sshll.u32 (!%p4384_p4), %s311_s20, 6 }
  0x77   : > { %s312_s22 = scalar_lea.sflag (!%p4384_p4), [#allocation4], %s311_s20  ;;  %s4141_s30 = scalar_lea.vmem (!%p4384_p4), [#allocation3], %s2849_s21 }
  0x7b   : > { %3878 = dma.done.wait (%p4385_p3), %s312_s22, 1024  }
  0x7c   : > { %3880 = vsyncadd (%p4385_p3), %s312_s22, 4294966272  ;;  %s320_s18 = sand.u32 1, %s3987_s28   ;;  %s2850_s2 = sshll.u32 %s311_s20, 10 }
  0x7d   : > { %s321_s0 = scalar_lea.sflag [#allocation7], %s320_s18  ;;  %s4148_s23 = scalar_lea.vmem [#allocation6], %s2850_s2 }
  0x7e   : > { %3882 = dma.done.wait (%p4385_p3), %s321_s0, 16384  }
  0x7f   : > { %3884 = vsyncadd (%p4385_p3), %s321_s0, 4294950912  ;;  %p4386_p11 = scmp.eq.s32.totalorder %s3987_s28, 0 }
  0x81   : > { %3886 = dma.done.wait (%p4386_p11), [#allocation7], 64   ;;  %p4387_p5 = pmov %p4386_p11 }
  0x83   : > { %3888 = vsyncadd (%p4387_p5), [#allocation7], 4294967232  ;;  %p4388_p8 = pmov %p4387_p5 }
  0x84   : > { %p4389_p9 = pmov %p4387_p5 }
  0x85   : > { %3890 = dma.done.wait (%p4388_p8), [#allocation10], 20480  }
  0x86   : > { %3892 = vsyncadd (%p4389_p9), [#allocation10], 4294946816  ;;  %p4390_p10 = scmp.ne.s32.totalorder %s3987_s28, 0 }
  0x88   : > { %373 = sbr.rel (%p4390_p10) target bundleno = 153 (0x99), region = 72 }
  0x8d   : > { %v376_v0 = vlaneseq  ;;  %v374_v2 = vld [vmem:[#allocation8] sm:$0xf] }
  0x8f   : > { %v377_v1 = vshrl.u32 %v376_v0, 7 }
  0x91   : > { %v378_v3 = vsub.s32 0, %v377_v1  ;;  %v382_v4 = vsub.s32 1, %v377_v1  ;;  %v386_v5 = vsub.s32 2, %v377_v1  ;;  %v390_v6 = vsub.s32 3, %v377_v1 }
  0x93   : > { %v379_v7 = vrot.slane %v374_v2, %v378_v3  ;;  %v383_v8 = vrot.slane %v374_v2, %v382_v4  ;;  %v387_v9 = vrot.slane %v374_v2, %v386_v5  ;;  %v391_v10 = vrot.slane %v374_v2, %v390_v6 }
  0x95   : > { %396 = vst [vmem:[#allocation2 + $0x30] sm:$0xff] %v379_v7  ;;  %400 = vst [vmem:[#allocation2 + $0x8] sm:$0xff] %v379_v7 }
  0x96   : > { %397 = vst [vmem:[#allocation2] sm:$0xff] %v383_v8  ;;  %401 = vst [vmem:[#allocation2 + $0x20] sm:$0xff] %v383_v8 }
  0x97   : > { %398 = vst [vmem:[#allocation2 + $0x18] sm:$0xff] %v387_v9  ;;  %402 = vst [vmem:[#allocation2 + $0x28] sm:$0xff] %v387_v9 }
  0x98   : > { %399 = vst [vmem:[#allocation2 + $0x10] sm:$0xff] %v391_v10  ;;  %403 = vst [vmem:[#allocation2 + $0x38] sm:$0xff] %v391_v10 }
  0x99 PF: > { %v3287_v11 = vld [vmem:[%s4148_s23 + $0xe4] ss:$16 sps:$4 sm:$0xff]   ;;  %v3291_v13 = vld [vmem:[%s4148_s23 + $0xe0] ss:$16 sps:$4 sm:$0xff]   ;;  %v413_v57 = vld [vmem:[%s4141_s30 + $0x8] sm:$0xff]  ;;  %p2983_p0 = scmp.ne.s32.totalorder %s3987_s28, 1 }
  0x9a   : > { %v3289_v12 = vld [vmem:[%s4148_s23 + $0x2e4] ss:$16 sps:$4 sm:$0xff]   ;;  %1192 = vmatprep.subr.bf16.mxu0 %v3287_v11  ;;  %v3292_v14 = vld [vmem:[%s4148_s23 + $0x2e0] ss:$16 sps:$4 sm:$0xff]   ;;  %v417_v58 = vld [vmem:[%s4141_s30 + $0x28] sm:$0xff] }
  0x9b   : > { %1235 = vmatprep.subr.bf16.mxu1 %v3289_v12  ;;  %v3293_v15 = vld [vmem:[%s4148_s23 + $0xc4] ss:$16 sps:$4 sm:$0xff]   ;;  %1193 = vmatpush1.bf16.msra.mxu0 %v3291_v13  ;;  %v3297_v17 = vld [vmem:[%s4148_s23 + $0xc0] ss:$16 sps:$4 sm:$0xff]   ;;  %v415_v59 = vld [vmem:[%s4141_s30 + $0x18] sm:$0xff]  ;;  %v421_v0 = vpack.c.bf16 %v417_v58, %v413_v57 }
  0x9c   : > { %1236 = vmatpush1.bf16.msra.mxu1 %v3292_v14  ;;  %v3295_v16 = vld [vmem:[%s4148_s23 + $0x2c4] ss:$16 sps:$4 sm:$0xff]   ;;  %1194 = vmatprep.subr.bf16.mxu0 %v3293_v15  ;;  %v3298_v18 = vld [vmem:[%s4148_s23 + $0x2c0] ss:$16 sps:$4 sm:$0xff]   ;;  %v419_v60 = vld [vmem:[%s4141_s30 + $0x38] sm:$0xff] }
  0x9d   : > { %1237 = vmatprep.subr.bf16.mxu1 %v3295_v16  ;;  %v3299_v19 = vld [vmem:[%s4148_s23 + $0xa4] ss:$16 sps:$4 sm:$0xff]   ;;  %v3303_v21 = vld [vmem:[%s4148_s23 + $0xa0] ss:$16 sps:$4 sm:$0xff]   ;;  %v423_v1 = vpack.c.bf16 %v419_v60, %v415_v59  ;;  %1224 = vmatprep.mubr.bf16.mxu0 %v421_v0  ;;  %v3431_v57 = vld [vmem:[%s4148_s23 + $0x1e8] ss:$16 sps:$4 sm:$0xff]  }
  0x9e   : > { %v3301_v20 = vld [vmem:[%s4148_s23 + $0x2a4] ss:$16 sps:$4 sm:$0xff]   ;;  %v3304_v22 = vld [vmem:[%s4148_s23 + $0x2a0] ss:$16 sps:$4 sm:$0xff]   ;;  %v3434_v58 = vld [vmem:[%s4148_s23 + $0x3e8] ss:$16 sps:$4 sm:$0xff]  }
  0x9f   : > { %1195 = vmatpush1.bf16.msra.mxu0 %v3297_v17  ;;  %v3305_v23 = vld [vmem:[%s4148_s23 + $0x84] ss:$16 sps:$4 sm:$0xff]   ;;  %v3309_v25 = vld [vmem:[%s4148_s23 + $0x80] ss:$16 sps:$4 sm:$0xff]   ;;  %1267 = vmatprep.mubr.bf16.mxu1 %v423_v1  ;;  %v3439_v59 = vld [vmem:[%s4148_s23 + $0x1cc] ss:$16 sps:$4 sm:$0xff]  }
  0xa0   : > { %1238 = vmatpush1.bf16.msra.mxu1 %v3298_v18  ;;  %1196 = vmatprep.subr.bf16.mxu0 %v3299_v19  ;;  %v3307_v24 = vld [vmem:[%s4148_s23 + $0x284] ss:$16 sps:$4 sm:$0xff]   ;;  %v3310_v26 = vld [vmem:[%s4148_s23 + $0x280] ss:$16 sps:$4 sm:$0xff]   ;;  %v3442_v60 = vld [vmem:[%s4148_s23 + $0x3cc] ss:$16 sps:$4 sm:$0xff]  }
  0xa1   : > { %1239 = vmatprep.subr.bf16.mxu1 %v3301_v20  ;;  %v3311_v27 = vld [vmem:[%s4148_s23 + $0x64] ss:$16 sps:$4 sm:$0xff]   ;;  %v3315_v29 = vld [vmem:[%s4148_s23 + $0x60] ss:$16 sps:$4 sm:$0xff]  }
  0xa2   : > { %v3313_v28 = vld [vmem:[%s4148_s23 + $0x264] ss:$16 sps:$4 sm:$0xff]   ;;  %v3316_v30 = vld [vmem:[%s4148_s23 + $0x260] ss:$16 sps:$4 sm:$0xff]  }
  0xa3   : > { %1197 = vmatpush1.bf16.msra.mxu0 %v3303_v21  ;;  %v3317_v31 = vld [vmem:[%s4148_s23 + $0x44] ss:$16 sps:$4 sm:$0xff]   ;;  %v3321_v33 = vld [vmem:[%s4148_s23 + $0x40] ss:$16 sps:$4 sm:$0xff]   ;;  %v3385_v21 = vld [vmem:[%s4148_s23 + $0xec] ss:$16 sps:$4 sm:$0xff]  }
  0xa4   : > { %1240 = vmatpush1.bf16.msra.mxu1 %v3304_v22  ;;  %1198 = vmatprep.subr.bf16.mxu0 %v3305_v23  ;;  %v3319_v32 = vld [vmem:[%s4148_s23 + $0x244] ss:$16 sps:$4 sm:$0xff]   ;;  %v3322_v34 = vld [vmem:[%s4148_s23 + $0x240] ss:$16 sps:$4 sm:$0xff]   ;;  %v3388_v22 = vld [vmem:[%s4148_s23 + $0x2ec] ss:$16 sps:$4 sm:$0xff]  }
  0xa5   : > { %1241 = vmatprep.subr.bf16.mxu1 %v3307_v24  ;;  %v3323_v35 = vld [vmem:[%s4148_s23 + $0x24] ss:$16 sps:$4 sm:$0xff]   ;;  %v3327_v37 = vld [vmem:[%s4148_s23 + $0x20] ss:$16 sps:$4 sm:$0xff]  }
  0xa6   : > { %v3325_v36 = vld [vmem:[%s4148_s23 + $0x224] ss:$16 sps:$4 sm:$0xff]   ;;  %v3328_v38 = vld [vmem:[%s4148_s23 + $0x220] ss:$16 sps:$4 sm:$0xff]  }
  0xa7   : > { %1199 = vmatpush1.bf16.msra.mxu0 %v3309_v25  ;;  %v3329_v39 = vld [vmem:[%s4148_s23 + $0x4] ss:$16 sps:$4 sm:$0xff]   ;;  %v3333_v41 = vld [vmem:[%s4148_s23] ss:$16 sps:$4 sm:$0xff]   ;;  %v3383_v25 = vld [vmem:[%s4148_s23 + $0xe8] ss:$16 sps:$4 sm:$0xff]  }
  0xa8   : > { %1242 = vmatpush1.bf16.msra.mxu1 %v3310_v26  ;;  %1200 = vmatprep.subr.bf16.mxu0 %v3311_v27  ;;  %v3331_v40 = vld [vmem:[%s4148_s23 + $0x204] ss:$16 sps:$4 sm:$0xff]   ;;  %v3334_v42 = vld [vmem:[%s4148_s23 + $0x200] ss:$16 sps:$4 sm:$0xff]   ;;  %v3386_v26 = vld [vmem:[%s4148_s23 + $0x2e8] ss:$16 sps:$4 sm:$0xff]  }
  0xa9   : > { %1243 = vmatprep.subr.bf16.mxu1 %v3313_v28  ;;  %v3335_v43 = vld [vmem:[%s4148_s23 + $0x1e4] ss:$16 sps:$4 sm:$0xff]   ;;  %v3339_v45 = vld [vmem:[%s4148_s23 + $0x1e0] ss:$16 sps:$4 sm:$0xff]   ;;  %v3391_v27 = vld [vmem:[%s4148_s23 + $0xcc] ss:$16 sps:$4 sm:$0xff]  }
  0xaa   : > { %v3337_v44 = vld [vmem:[%s4148_s23 + $0x3e4] ss:$16 sps:$4 sm:$0xff]   ;;  %v3340_v46 = vld [vmem:[%s4148_s23 + $0x3e0] ss:$16 sps:$4 sm:$0xff]   ;;  %v3394_v28 = vld [vmem:[%s4148_s23 + $0x2cc] ss:$16 sps:$4 sm:$0xff]  }
  0xab   : > { %1201 = vmatpush1.bf16.msra.mxu0 %v3315_v29  ;;  %v3341_v47 = vld [vmem:[%s4148_s23 + $0x1c4] ss:$16 sps:$4 sm:$0xff]   ;;  %v3345_v49 = vld [vmem:[%s4148_s23 + $0x1c0] ss:$16 sps:$4 sm:$0xff]   ;;  %v3389_v29 = vld [vmem:[%s4148_s23 + $0xc8] ss:$16 sps:$4 sm:$0xff]  }
  0xac   : > { %1244 = vmatpush1.bf16.msra.mxu1 %v3316_v30  ;;  %1202 = vmatprep.subr.bf16.mxu0 %v3317_v31  ;;  %v3343_v48 = vld [vmem:[%s4148_s23 + $0x3c4] ss:$16 sps:$4 sm:$0xff]   ;;  %v3346_v50 = vld [vmem:[%s4148_s23 + $0x3c0] ss:$16 sps:$4 sm:$0xff]   ;;  %v3392_v30 = vld [vmem:[%s4148_s23 + $0x2c8] ss:$16 sps:$4 sm:$0xff]  }
  0xad   : > { %1245 = vmatprep.subr.bf16.mxu1 %v3319_v32  ;;  %v3347_v51 = vld [vmem:[%s4148_s23 + $0x1a4] ss:$16 sps:$4 sm:$0xff]   ;;  %v3351_v53 = vld [vmem:[%s4148_s23 + $0x1a0] ss:$16 sps:$4 sm:$0xff]   ;;  %v3397_v31 = vld [vmem:[%s4148_s23 + $0xac] ss:$16 sps:$4 sm:$0xff]  }
  0xae   : > { %v3349_v52 = vld [vmem:[%s4148_s23 + $0x3a4] ss:$16 sps:$4 sm:$0xff]   ;;  %v3352_v54 = vld [vmem:[%s4148_s23 + $0x3a0] ss:$16 sps:$4 sm:$0xff]   ;;  %v3400_v32 = vld [vmem:[%s4148_s23 + $0x2ac] ss:$16 sps:$4 sm:$0xff]  }
  0xaf   : > { %1203 = vmatpush1.bf16.msra.mxu0 %v3321_v33  ;;  %v3353_v55 = vld [vmem:[%s4148_s23 + $0x184] ss:$16 sps:$4 sm:$0xff]   ;;  %v3357_v61 = vld [vmem:[%s4148_s23 + $0x180] ss:$16 sps:$4 sm:$0xff]   ;;  %v3395_v33 = vld [vmem:[%s4148_s23 + $0xa8] ss:$16 sps:$4 sm:$0xff]  }
  0xb0   : > { %1246 = vmatpush1.bf16.msra.mxu1 %v3322_v34  ;;  %1204 = vmatprep.subr.bf16.mxu0 %v3323_v35  ;;  %v3355_v56 = vld [vmem:[%s4148_s23 + $0x384] ss:$16 sps:$4 sm:$0xff]   ;;  %v3358_v62 = vld [vmem:[%s4148_s23 + $0x380] ss:$16 sps:$4 sm:$0xff]   ;;  %v3398_v34 = vld [vmem:[%s4148_s23 + $0x2a8] ss:$16 sps:$4 sm:$0xff]  }
  0xb1   : > { %1247 = vmatprep.subr.bf16.mxu1 %v3325_v36  ;;  %v3359_v63 = vld [vmem:[%s4148_s23 + $0x164] ss:$16 sps:$4 sm:$0xff]   ;;  %v3363_v3 = vld [vmem:[%s4148_s23 + $0x160] ss:$16 sps:$4 sm:$0xff]   ;;  %v3403_v35 = vld [vmem:[%s4148_s23 + $0x8c] ss:$16 sps:$4 sm:$0xff]  }
  0xb2   : > { %v3361_v2 = vld [vmem:[%s4148_s23 + $0x364] ss:$16 sps:$4 sm:$0xff]   ;;  %v3364_v4 = vld [vmem:[%s4148_s23 + $0x360] ss:$16 sps:$4 sm:$0xff]   ;;  %v3406_v36 = vld [vmem:[%s4148_s23 + $0x28c] ss:$16 sps:$4 sm:$0xff]  }
  0xb3   : > { %1205 = vmatpush1.bf16.msra.mxu0 %v3327_v37  ;;  %v3365_v5 = vld [vmem:[%s4148_s23 + $0x144] ss:$16 sps:$4 sm:$0xff]   ;;  %v3369_v7 = vld [vmem:[%s4148_s23 + $0x140] ss:$16 sps:$4 sm:$0xff]   ;;  %v3401_v37 = vld [vmem:[%s4148_s23 + $0x88] ss:$16 sps:$4 sm:$0xff]  }
  0xb4   : > { %1248 = vmatpush1.bf16.msra.mxu1 %v3328_v38  ;;  %1206 = vmatprep.subr.bf16.mxu0 %v3329_v39  ;;  %v3367_v6 = vld [vmem:[%s4148_s23 + $0x344] ss:$16 sps:$4 sm:$0xff]   ;;  %v3370_v8 = vld [vmem:[%s4148_s23 + $0x340] ss:$16 sps:$4 sm:$0xff]   ;;  %v3404_v38 = vld [vmem:[%s4148_s23 + $0x288] ss:$16 sps:$4 sm:$0xff]  }
  0xb5   : > { %1249 = vmatprep.subr.bf16.mxu1 %v3331_v40  ;;  %v3371_v9 = vld [vmem:[%s4148_s23 + $0x124] ss:$16 sps:$4 sm:$0xff]   ;;  %v3375_v11 = vld [vmem:[%s4148_s23 + $0x120] ss:$16 sps:$4 sm:$0xff]   ;;  %v3409_v39 = vld [vmem:[%s4148_s23 + $0x6c] ss:$16 sps:$4 sm:$0xff]  }
  0xb6   : > { %v3373_v10 = vld [vmem:[%s4148_s23 + $0x324] ss:$16 sps:$4 sm:$0xff]   ;;  %v3376_v12 = vld [vmem:[%s4148_s23 + $0x320] ss:$16 sps:$4 sm:$0xff]   ;;  %v3412_v40 = vld [vmem:[%s4148_s23 + $0x26c] ss:$16 sps:$4 sm:$0xff]  }
  0xb7   : > { %1207 = vmatpush1.bf16.msra.mxu0 %v3333_v41  ;;  %v3377_v13 = vld [vmem:[%s4148_s23 + $0x104] ss:$16 sps:$4 sm:$0xff]   ;;  %v3381_v15 = vld [vmem:[%s4148_s23 + $0x100] ss:$16 sps:$4 sm:$0xff]   ;;  %v3407_v41 = vld [vmem:[%s4148_s23 + $0x68] ss:$16 sps:$4 sm:$0xff]  }
  0xb8   : > { %1250 = vmatpush1.bf16.msra.mxu1 %v3334_v42  ;;  %1208 = vmatprep.subr.bf16.mxu0 %v3335_v43  ;;  %v3379_v14 = vld [vmem:[%s4148_s23 + $0x304] ss:$16 sps:$4 sm:$0xff]   ;;  %v3382_v16 = vld [vmem:[%s4148_s23 + $0x300] ss:$16 sps:$4 sm:$0xff]   ;;  %v3410_v42 = vld [vmem:[%s4148_s23 + $0x268] ss:$16 sps:$4 sm:$0xff]  }
  0xb9   : > { %1251 = vmatprep.subr.bf16.mxu1 %v3337_v44  ;;  %v412_v17 = vld [vmem:[%s4141_s30] sm:$0xff]  ;;  %v414_v19 = vld [vmem:[%s4141_s30 + $0x10] sm:$0xff]  ;;  %v3415_v43 = vld [vmem:[%s4148_s23 + $0x4c] ss:$16 sps:$4 sm:$0xff]  }
  0xba   : > { %v416_v18 = vld [vmem:[%s4141_s30 + $0x20] sm:$0xff]  ;;  %v418_v20 = vld [vmem:[%s4141_s30 + $0x30] sm:$0xff]  ;;  %v3418_v44 = vld [vmem:[%s4148_s23 + $0x24c] ss:$16 sps:$4 sm:$0xff]  }
  0xbb   : > { %1209 = vmatpush2.bf16.msra.mxu0 %v3339_v45  ;;  %v4238_v23 = vpack.c.bf16 %v416_v18, %v412_v17  ;;  %v4240_v24 = vpack.c.bf16 %v418_v20, %v414_v19  ;;  %v3413_v45 = vld [vmem:[%s4148_s23 + $0x48] ss:$16 sps:$4 sm:$0xff]   ;;  %v3475_v19 = vld [vmem:[%s4148_s23 + $0x10c] ss:$16 sps:$4 sm:$0xff]  }
  0xbc   : > { %1252 = vmatpush2.bf16.msra.mxu1 %v3340_v46  ;;  %1210 = vmatprep.subr.bf16.mxu0 %v3341_v47  ;;  %v3416_v46 = vld [vmem:[%s4148_s23 + $0x248] ss:$16 sps:$4 sm:$0xff]   ;;  %v3421_v47 = vld [vmem:[%s4148_s23 + $0x2c] ss:$16 sps:$4 sm:$0xff]  }
  0xbd   : > { %1253 = vmatprep.subr.bf16.mxu1 %v3343_v48  ;;  %v3424_v48 = vld [vmem:[%s4148_s23 + $0x22c] ss:$16 sps:$4 sm:$0xff]   ;;  %v3467_v17 = vld [vmem:[%s4148_s23 + $0x128] ss:$16 sps:$4 sm:$0xff]  }
  0xbe   : > { %v3470_v18 = vld [vmem:[%s4148_s23 + $0x328] ss:$16 sps:$4 sm:$0xff]   ;;  %v3478_v20 = vld [vmem:[%s4148_s23 + $0x30c] ss:$16 sps:$4 sm:$0xff]  }
  0xbf   : > { %1211 = vmatpush2.bf16.msra.mxu0 %v3345_v49  ;;  %v3419_v49 = vld [vmem:[%s4148_s23 + $0x28] ss:$16 sps:$4 sm:$0xff]  }
  0xc0   : > { %1254 = vmatpush2.bf16.msra.mxu1 %v3346_v50  ;;  %1212 = vmatprep.subr.bf16.mxu0 %v3347_v51  ;;  %v3422_v50 = vld [vmem:[%s4148_s23 + $0x228] ss:$16 sps:$4 sm:$0xff]   ;;  %v3427_v51 = vld [vmem:[%s4148_s23 + $0xc] ss:$16 sps:$4 sm:$0xff]  }
  0xc1   : > { %1255 = vmatprep.subr.bf16.mxu1 %v3349_v52  ;;  %v3430_v52 = vld [vmem:[%s4148_s23 + $0x20c] ss:$16 sps:$4 sm:$0xff]  }
  0xc3   : > { %1213 = vmatpush2.bf16.msra.mxu0 %v3351_v53  ;;  %v3425_v53 = vld [vmem:[%s4148_s23 + $0x8] ss:$16 sps:$4 sm:$0xff]  }
  0xc4   : > { %1256 = vmatpush2.bf16.msra.mxu1 %v3352_v54  ;;  %1214 = vmatprep.subr.bf16.mxu0 %v3353_v55  ;;  %v3428_v54 = vld [vmem:[%s4148_s23 + $0x208] ss:$16 sps:$4 sm:$0xff]   ;;  %v3433_v55 = vld [vmem:[%s4148_s23 + $0x1ec] ss:$16 sps:$4 sm:$0xff]  }
  0xc5   : > { %1257 = vmatprep.subr.bf16.mxu1 %v3355_v56  ;;  %v3436_v56 = vld [vmem:[%s4148_s23 + $0x3ec] ss:$16 sps:$4 sm:$0xff]  }
  0xc7   : > { %1215 = vmatpush2.bf16.msra.mxu0 %v3357_v61  ;;  %v3437_v61 = vld [vmem:[%s4148_s23 + $0x1c8] ss:$16 sps:$4 sm:$0xff]  }
  0xc8   : > { %1258 = vmatpush2.bf16.msra.mxu1 %v3358_v62  ;;  %1216 = vmatprep.subr.bf16.mxu0 %v3359_v63  ;;  %v3440_v62 = vld [vmem:[%s4148_s23 + $0x3c8] ss:$16 sps:$4 sm:$0xff]   ;;  %v3445_v63 = vld [vmem:[%s4148_s23 + $0x1ac] ss:$16 sps:$4 sm:$0xff]  }
  0xc9   : > { %1259 = vmatprep.subr.bf16.mxu1 %v3361_v2  ;;  %v3446_v2 = vld [vmem:[%s4148_s23 + $0x3a8] ss:$16 sps:$4 sm:$0xff]  }
  0xcb   : > { %1217 = vmatpush2.bf16.msra.mxu0 %v3363_v3  ;;  %v3451_v3 = vld [vmem:[%s4148_s23 + $0x18c] ss:$16 sps:$4 sm:$0xff]  }
  0xcc   : > { %1260 = vmatpush2.bf16.msra.mxu1 %v3364_v4  ;;  %1218 = vmatprep.subr.bf16.mxu0 %v3365_v5  ;;  %v3454_v4 = vld [vmem:[%s4148_s23 + $0x38c] ss:$16 sps:$4 sm:$0xff]   ;;  %v3449_v5 = vld [vmem:[%s4148_s23 + $0x188] ss:$16 sps:$4 sm:$0xff]  }
  0xcd   : > { %1261 = vmatprep.subr.bf16.mxu1 %v3367_v6  ;;  %v3452_v6 = vld [vmem:[%s4148_s23 + $0x388] ss:$16 sps:$4 sm:$0xff]  }
  0xcf   : > { %1219 = vmatpush2.bf16.msra.mxu0 %v3369_v7  ;;  %v3457_v7 = vld [vmem:[%s4148_s23 + $0x16c] ss:$16 sps:$4 sm:$0xff]  }
  0xd0   : > { %1262 = vmatpush2.bf16.msra.mxu1 %v3370_v8  ;;  %1220 = vmatprep.subr.bf16.mxu0 %v3371_v9  ;;  %v3460_v8 = vld [vmem:[%s4148_s23 + $0x36c] ss:$16 sps:$4 sm:$0xff]   ;;  %v3455_v9 = vld [vmem:[%s4148_s23 + $0x168] ss:$16 sps:$4 sm:$0xff]  }
  0xd1   : > { %1263 = vmatprep.subr.bf16.mxu1 %v3373_v10  ;;  %v3458_v10 = vld [vmem:[%s4148_s23 + $0x368] ss:$16 sps:$4 sm:$0xff]  }
  0xd3   : > { %1221 = vmatpush2.bf16.msra.mxu0 %v3375_v11  ;;  %v3463_v11 = vld [vmem:[%s4148_s23 + $0x14c] ss:$16 sps:$4 sm:$0xff]  }
  0xd4   : > { %1264 = vmatpush2.bf16.msra.mxu1 %v3376_v12  ;;  %1222 = vmatprep.subr.bf16.mxu0 %v3377_v13  ;;  %v3466_v12 = vld [vmem:[%s4148_s23 + $0x34c] ss:$16 sps:$4 sm:$0xff]   ;;  %v3461_v13 = vld [vmem:[%s4148_s23 + $0x148] ss:$16 sps:$4 sm:$0xff]  }
  0xd5   : > { %1265 = vmatprep.subr.bf16.mxu1 %v3379_v14  ;;  %v3464_v14 = vld [vmem:[%s4148_s23 + $0x348] ss:$16 sps:$4 sm:$0xff]  }
  0xd7   : > { %1223 = vmatpush2.bf16.msra.mxu0 %v3381_v15  ;;  %v3469_v15 = vld [vmem:[%s4148_s23 + $0x12c] ss:$16 sps:$4 sm:$0xff]  }
  0xd8   : > { %1266 = vmatpush2.bf16.msra.mxu1 %v3382_v16  ;;  %1278 = vmatprep.subr.bf16.mxu0 %v3385_v21  ;;  %v3472_v16 = vld [vmem:[%s4148_s23 + $0x32c] ss:$16 sps:$4 sm:$0xff]   ;;  %v3473_v21 = vld [vmem:[%s4148_s23 + $0x108] ss:$16 sps:$4 sm:$0xff]  }
  0xd9   : > { %1321 = vmatprep.subr.bf16.mxu1 %v3388_v22  ;;  %v3476_v22 = vld [vmem:[%s4148_s23 + $0x308] ss:$16 sps:$4 sm:$0xff]  }
  0xda   : > { %1225 = vmatmul.mubr.bf16.vlgmr.msra.gmra.mxu0 %v4238_v23 }
  0xdb   : > { %1268 = vmatmul.mubr.bf16.vlgmr.msra.gmra.mxu1 %v4240_v24  ;;  %1279 = vmatpush1.bf16.msra.mxu0 %v3383_v25 }
  0xdc   : > { %1322 = vmatpush1.bf16.msra.mxu1 %v3386_v26  ;;  %1280 = vmatprep.subr.bf16.mxu0 %v3391_v27  ;;  %v404_v26 = vld [vmem:[#allocation2 + $0x30] sm:$0xff] }
  0xdd   : > { %1323 = vmatprep.subr.bf16.mxu1 %v3394_v28  ;;  %1310 = vmatprep.mubr.bf16.mxu0 %v421_v0  ;;  %v3448_v0 = vld [vmem:[%s4148_s23 + $0x3ac] ss:$16 sps:$4 sm:$0xff]  }
  0xde   : > { %1353 = vmatprep.mubr.bf16.mxu1 %v423_v1  ;;  %v3443_v1 = vld [vmem:[%s4148_s23 + $0x1a8] ss:$16 sps:$4 sm:$0xff]  }
  0xdf   : > { %1281 = vmatpush1.bf16.msra.mxu0 %v3389_v29 }
  0xe0   : > { %1324 = vmatpush1.bf16.msra.mxu1 %v3392_v30  ;;  %1282 = vmatprep.subr.bf16.mxu0 %v3397_v31  ;;  %v405_v30 = vld [vmem:[#allocation2] sm:$0xff] }
  0xe1   : > { %1325 = vmatprep.subr.bf16.mxu1 %v3400_v32 }
  0xe3   : > { %1283 = vmatpush1.bf16.msra.mxu0 %v3395_v33 }
  0xe4   : > { %1326 = vmatpush1.bf16.msra.mxu1 %v3398_v34  ;;  %1284 = vmatprep.subr.bf16.mxu0 %v3403_v35  ;;  %v408_v35 = vld [vmem:[#allocation2 + $0x8] sm:$0xff] }
  0xe5   : > { %1327 = vmatprep.subr.bf16.mxu1 %v3406_v36 }
  0xe7   : > { %1285 = vmatpush1.bf16.msra.mxu0 %v3401_v37 }
  0xe8   : > { %1328 = vmatpush1.bf16.msra.mxu1 %v3404_v38  ;;  %1286 = vmatprep.subr.bf16.mxu0 %v3409_v39 }
  0xe9   : > { %1329 = vmatprep.subr.bf16.mxu1 %v3412_v40  ;;  %v409_v40 = vld [vmem:[#allocation2 + $0x20] sm:$0xff] }
  0xeb   : > { %1287 = vmatpush1.bf16.msra.mxu0 %v3407_v41 }
  0xec   : > { %1330 = vmatpush1.bf16.msra.mxu1 %v3410_v42  ;;  %1288 = vmatprep.subr.bf16.mxu0 %v3415_v43 }
  0xed   : > { %1331 = vmatprep.subr.bf16.mxu1 %v3418_v44  ;;  %v406_v44 = vld [vmem:[#allocation2 + $0x18] sm:$0xff] }
  0xef   : > { %1289 = vmatpush1.bf16.msra.mxu0 %v3413_v45 }
  0xf0   : > { %1332 = vmatpush1.bf16.msra.mxu1 %v3416_v46  ;;  %1290 = vmatprep.subr.bf16.mxu0 %v3421_v47 }
  0xf1   : > { %1333 = vmatprep.subr.bf16.mxu1 %v3424_v48  ;;  %v407_v48 = vld [vmem:[#allocation2 + $0x10] sm:$0xff] }
  0xf3   : > { %1291 = vmatpush1.bf16.msra.mxu0 %v3419_v49 }
  0xf4   : > { %1334 = vmatpush1.bf16.msra.mxu1 %v3422_v50  ;;  %1292 = vmatprep.subr.bf16.mxu0 %v3427_v51 }
  0xf5   : > { %1335 = vmatprep.subr.bf16.mxu1 %v3430_v52 }
  0xf7   : > { %1293 = vmatpush1.bf16.msra.mxu0 %v3425_v53  ;;  %v410_v53 = vld [vmem:[#allocation2 + $0x28] sm:$0xff] }
  0xf8   : > { %1336 = vmatpush1.bf16.msra.mxu1 %v3428_v54  ;;  %1294 = vmatprep.subr.bf16.mxu0 %v3433_v55 }
  0xf9   : > { %1337 = vmatprep.subr.bf16.mxu1 %v3436_v56 }
  0xfb   : > { %1295 = vmatpush2.bf16.msra.mxu0 %v3431_v57 }
  0xfc   : > { %1338 = vmatpush2.bf16.msra.mxu1 %v3434_v58  ;;  %1296 = vmatprep.subr.bf16.mxu0 %v3439_v59  ;;  %v411_v58 = vld [vmem:[#allocation2 + $0x38] sm:$0xff] }
  0xfd   : > { %1339 = vmatprep.subr.bf16.mxu1 %v3442_v60 }
  0xff   : > { %1297 = vmatpush2.bf16.msra.mxu0 %v3437_v61 }
 0x100   : > { %1340 = vmatpush2.bf16.msra.mxu1 %v3440_v62  ;;  %1298 = vmatprep.subr.bf16.mxu0 %v3445_v63 }
 0x101   : > { %1341 = vmatprep.subr.bf16.mxu1 %v3448_v0 }
 0x103   : > { %1299 = vmatpush2.bf16.msra.mxu0 %v3443_v1 }
 0x104   : > { %1342 = vmatpush2.bf16.msra.mxu1 %v3446_v2  ;;  %1300 = vmatprep.subr.bf16.mxu0 %v3451_v3 }
 0x105   : > { %1343 = vmatprep.subr.bf16.mxu1 %v3454_v4 }
 0x107   : > { %1301 = vmatpush2.bf16.msra.mxu0 %v3449_v5 }
 0x108   : > { %1344 = vmatpush2.bf16.msra.mxu1 %v3452_v6  ;;  %1302 = vmatprep.subr.bf16.mxu0 %v3457_v7 }
 0x109   : > { %1345 = vmatprep.subr.bf16.mxu1 %v3460_v8 }
 0x10b   : > { %1303 = vmatpush2.bf16.msra.mxu0 %v3455_v9 }
 0x10c   : > { %1346 = vmatpush2.bf16.msra.mxu1 %v3458_v10  ;;  %1304 = vmatprep.subr.bf16.mxu0 %v3463_v11 }
 0x10d   : > { %1347 = vmatprep.subr.bf16.mxu1 %v3466_v12 }
 0x10f   : > { %1305 = vmatpush2.bf16.msra.mxu0 %v3461_v13 }
 0x110   : > { %1348 = vmatpush2.bf16.msra.mxu1 %v3464_v14  ;;  %1306 = vmatprep.subr.bf16.mxu0 %v3469_v15 }
 0x111   : > { %1349 = vmatprep.subr.bf16.mxu1 %v3472_v16 }
 0x113   : > { %1307 = vmatpush2.bf16.msra.mxu0 %v3467_v17 }
 0x114   : > { %1350 = vmatpush2.bf16.msra.mxu1 %v3470_v18  ;;  %1308 = vmatprep.subr.bf16.mxu0 %v3475_v19 }
 0x115   : > { %1351 = vmatprep.subr.bf16.mxu1 %v3478_v20 }
 0x117   : > { %1309 = vmatpush2.bf16.msra.mxu0 %v3473_v21 }
 0x118   : > { %1352 = vmatpush2.bf16.msra.mxu1 %v3476_v22 }
 0x11a   : > { %1311 = vmatmul.mubr.bf16.vlgmr.msra.gmra.mxu0 %v4238_v23 }
 0x11b   : > { %1354 = vmatmul.mubr.bf16.vlgmr.msra.gmra.mxu1 %v4240_v24 }
 0x19a   : > { %v1226_v25 = vpop.f32.mrf.mxu0 }
 0x19b   : > { %v1269_v27 = vpop.f32.mrf.mxu1 }
 0x19c   : > { %v1270_v28 = vadd.f32 %v1269_v27, %v1226_v25  ;;  %v1228_v29 = vpop.f32.mrf.mxu0 }
 0x19d   : > { %v1271_v31 = vpop.f32.mrf.mxu1 }
 0x19e   : > { %v1364_v32 = vadd.f32 %v1270_v28, %v404_v26  ;;  %v1272_v33 = vadd.f32 %v1271_v31, %v1228_v29  ;;  %v1230_v34 = vpop.f32.mrf.mxu0 }
 0x19f   : > { %v1273_v36 = vpop.f32.mrf.mxu1 }
 0x1a0   : > { %1372 = vst [vmem:[#allocation2 + $0x30] sm:$0xff] %v1364_v32  ;;  %v1365_v37 = vadd.f32 %v1272_v33, %v405_v30  ;;  %v1274_v38 = vadd.f32 %v1273_v36, %v1230_v34  ;;  %v1232_v39 = vpop.f32.mrf.mxu0 }
 0x1a1   : > { %v1275_v23 = vpop.f32.mrf.mxu1 }
 0x1a2   : > { %1373 = vst [vmem:[#allocation2] sm:$0xff] %v1365_v37  ;;  %v1368_v24 = vadd.f32 %v1274_v38, %v408_v35  ;;  %v1276_v41 = vadd.f32 %v1275_v23, %v1232_v39 }
 0x1a4   : > { %1376 = vst [vmem:[#allocation2 + $0x8] sm:$0xff] %v1368_v24  ;;  %v1369_v42 = vadd.f32 %v1276_v41, %v409_v40 }
 0x1a6   : > { %1377 = vst [vmem:[#allocation2 + $0x20] sm:$0xff] %v1369_v42 }
 0x1da   : > { %v1312_v43 = vpop.f32.mrf.mxu0 }
 0x1db   : > { %v1355_v45 = vpop.f32.mrf.mxu1 }
 0x1dc   : > { %v1356_v46 = vadd.f32 %v1355_v45, %v1312_v43  ;;  %v1314_v47 = vpop.f32.mrf.mxu0 }
 0x1dd   : > { %v1357_v49 = vpop.f32.mrf.mxu1 }
 0x1de   : > { %v1366_v50 = vadd.f32 %v1356_v46, %v406_v44  ;;  %v1358_v51 = vadd.f32 %v1357_v49, %v1314_v47  ;;  %v1316_v52 = vpop.f32.mrf.mxu0 }
 0x1df   : > { %v1359_v54 = vpop.f32.mrf.mxu1 }
 0x1e0   : > { %1374 = vst [vmem:[#allocation2 + $0x18] sm:$0xff] %v1366_v50  ;;  %v1367_v55 = vadd.f32 %v1358_v51, %v407_v48  ;;  %v1360_v56 = vadd.f32 %v1359_v54, %v1316_v52  ;;  %v1318_v57 = vpop.f32.mrf.mxu0 }
 0x1e1   : > { %v1361_v59 = vpop.f32.mrf.mxu1 }
 0x1e2   : > { %1375 = vst [vmem:[#allocation2 + $0x10] sm:$0xff] %v1367_v55  ;;  %v1370_v60 = vadd.f32 %v1360_v56, %v410_v53  ;;  %v1362_v61 = vadd.f32 %v1361_v59, %v1318_v57  ;;  %1383 = sbr.rel (%p2983_p0) target bundleno = 1028 (0x404), region = 76 }
 0x1e4   : > { %1378 = vst [vmem:[#allocation2 + $0x28] sm:$0xff] %v1370_v60  ;;  %v1371_v62 = vadd.f32 %v1362_v61, %v411_v58 }
 0x1e6   : > { %1379 = vst [vmem:[#allocation2 + $0x38] sm:$0xff] %v1371_v62 }
 0x1e7   : > { %v3479_v63 = vld [vmem:[#allocation9 + $0xe4] ss:$16 sps:$4 sm:$0xff]   ;;  %v3483_v1 = vld [vmem:[#allocation9 + $0xe0] ss:$16 sps:$4 sm:$0xff]  }
 0x1e8   : > { %v3481_v0 = vld [vmem:[#allocation9 + $0x2e4] ss:$16 sps:$4 sm:$0xff]   ;;  %2194 = vmatprep.subr.bf16.mxu0 %v3479_v63  ;;  %v3484_v2 = vld [vmem:[#allocation9 + $0x2e0] ss:$16 sps:$4 sm:$0xff]  }
 0x1e9   : > { %2237 = vmatprep.subr.bf16.mxu1 %v3481_v0  ;;  %v3485_v3 = vld [vmem:[#allocation9 + $0xc4] ss:$16 sps:$4 sm:$0xff]   ;;  %2195 = vmatpush1.bf16.msra.mxu0 %v3483_v1  ;;  %v3489_v5 = vld [vmem:[#allocation9 + $0xc0] ss:$16 sps:$4 sm:$0xff]  }
 0x1ea   : > { %2238 = vmatpush1.bf16.msra.mxu1 %v3484_v2  ;;  %v3487_v4 = vld [vmem:[#allocation9 + $0x2c4] ss:$16 sps:$4 sm:$0xff]   ;;  %2196 = vmatprep.subr.bf16.mxu0 %v3485_v3  ;;  %v3490_v6 = vld [vmem:[#allocation9 + $0x2c0] ss:$16 sps:$4 sm:$0xff]  }
 0x1eb   : > { %2239 = vmatprep.subr.bf16.mxu1 %v3487_v4  ;;  %v3491_v7 = vld [vmem:[#allocation9 + $0xa4] ss:$16 sps:$4 sm:$0xff]   ;;  %v3495_v9 = vld [vmem:[#allocation9 + $0xa0] ss:$16 sps:$4 sm:$0xff]  }
 0x1ec   : > { %v3493_v8 = vld [vmem:[#allocation9 + $0x2a4] ss:$16 sps:$4 sm:$0xff]   ;;  %v3496_v10 = vld [vmem:[#allocation9 + $0x2a0] ss:$16 sps:$4 sm:$0xff]  }
 0x1ed   : > { %2197 = vmatpush1.bf16.msra.mxu0 %v3489_v5  ;;  %v3497_v11 = vld [vmem:[#allocation9 + $0x84] ss:$16 sps:$4 sm:$0xff]   ;;  %v3501_v13 = vld [vmem:[#allocation9 + $0x80] ss:$16 sps:$4 sm:$0xff]  }
 0x1ee   : > { %2240 = vmatpush1.bf16.msra.mxu1 %v3490_v6  ;;  %2198 = vmatprep.subr.bf16.mxu0 %v3491_v7  ;;  %v3499_v12 = vld [vmem:[#allocation9 + $0x284] ss:$16 sps:$4 sm:$0xff]   ;;  %v3502_v14 = vld [vmem:[#allocation9 + $0x280] ss:$16 sps:$4 sm:$0xff]  }
 0x1ef   : > { %2241 = vmatprep.subr.bf16.mxu1 %v3493_v8  ;;  %v3503_v15 = vld [vmem:[#allocation9 + $0x64] ss:$16 sps:$4 sm:$0xff]   ;;  %v3507_v17 = vld [vmem:[#allocation9 + $0x60] ss:$16 sps:$4 sm:$0xff]  }
 0x1f0   : > { %v3505_v16 = vld [vmem:[#allocation9 + $0x264] ss:$16 sps:$4 sm:$0xff]   ;;  %v3508_v18 = vld [vmem:[#allocation9 + $0x260] ss:$16 sps:$4 sm:$0xff]  }
 0x1f1   : > { %2199 = vmatpush1.bf16.msra.mxu0 %v3495_v9  ;;  %v3509_v19 = vld [vmem:[#allocation9 + $0x44] ss:$16 sps:$4 sm:$0xff]   ;;  %v3513_v21 = vld [vmem:[#allocation9 + $0x40] ss:$16 sps:$4 sm:$0xff]  }
 0x1f2   : > { %2242 = vmatpush1.bf16.msra.mxu1 %v3496_v10  ;;  %2200 = vmatprep.subr.bf16.mxu0 %v3497_v11  ;;  %v3511_v20 = vld [vmem:[#allocation9 + $0x244] ss:$16 sps:$4 sm:$0xff]   ;;  %v3514_v22 = vld [vmem:[#allocation9 + $0x240] ss:$16 sps:$4 sm:$0xff]  }
 0x1f3   : > { %2243 = vmatprep.subr.bf16.mxu1 %v3499_v12  ;;  %v3515_v25 = vld [vmem:[#allocation9 + $0x24] ss:$16 sps:$4 sm:$0xff]   ;;  %v3519_v27 = vld [vmem:[#allocation9 + $0x20] ss:$16 sps:$4 sm:$0xff]  }
 0x1f4   : > { %v3517_v26 = vld [vmem:[#allocation9 + $0x224] ss:$16 sps:$4 sm:$0xff]   ;;  %v3520_v28 = vld [vmem:[#allocation9 + $0x220] ss:$16 sps:$4 sm:$0xff]  }
 0x1f5   : > { %2201 = vmatpush1.bf16.msra.mxu0 %v3501_v13  ;;  %v3521_v29 = vld [vmem:[#allocation9 + $0x4] ss:$16 sps:$4 sm:$0xff]   ;;  %v3525_v31 = vld [vmem:[#allocation9] ss:$16 sps:$4 sm:$0xff]  }
 0x1f6   : > { %2244 = vmatpush1.bf16.msra.mxu1 %v3502_v14  ;;  %2202 = vmatprep.subr.bf16.mxu0 %v3503_v15  ;;  %v3523_v30 = vld [vmem:[#allocation9 + $0x204] ss:$16 sps:$4 sm:$0xff]   ;;  %v3526_v32 = vld [vmem:[#allocation9 + $0x200] ss:$16 sps:$4 sm:$0xff]  }
 0x1f7   : > { %2245 = vmatprep.subr.bf16.mxu1 %v3505_v16  ;;  %v3527_v33 = vld [vmem:[#allocation9 + $0x1e4] ss:$16 sps:$4 sm:$0xff]   ;;  %v3531_v35 = vld [vmem:[#allocation9 + $0x1e0] ss:$16 sps:$4 sm:$0xff]  }
 0x1f8   : > { %v3529_v34 = vld [vmem:[#allocation9 + $0x3e4] ss:$16 sps:$4 sm:$0xff]   ;;  %v3532_v36 = vld [vmem:[#allocation9 + $0x3e0] ss:$16 sps:$4 sm:$0xff]  }
 0x1f9   : > { %2203 = vmatpush1.bf16.msra.mxu0 %v3507_v17  ;;  %v3533_v37 = vld [vmem:[#allocation9 + $0x1c4] ss:$16 sps:$4 sm:$0xff]   ;;  %v3537_v39 = vld [vmem:[#allocation9 + $0x1c0] ss:$16 sps:$4 sm:$0xff]   ;;  %v3577_v17 = vld [vmem:[#allocation9 + $0xec] ss:$16 sps:$4 sm:$0xff]  }
 0x1fa   : > { %2246 = vmatpush1.bf16.msra.mxu1 %v3508_v18  ;;  %2204 = vmatprep.subr.bf16.mxu0 %v3509_v19  ;;  %v3535_v38 = vld [vmem:[#allocation9 + $0x3c4] ss:$16 sps:$4 sm:$0xff]   ;;  %v3538_v40 = vld [vmem:[#allocation9 + $0x3c0] ss:$16 sps:$4 sm:$0xff]   ;;  %v3580_v18 = vld [vmem:[#allocation9 + $0x2ec] ss:$16 sps:$4 sm:$0xff]  }
 0x1fb   : > { %2247 = vmatprep.subr.bf16.mxu1 %v3511_v20  ;;  %v3539_v23 = vld [vmem:[#allocation9 + $0x1a4] ss:$16 sps:$4 sm:$0xff]   ;;  %v3543_v41 = vld [vmem:[#allocation9 + $0x1a0] ss:$16 sps:$4 sm:$0xff]  }
 0x1fc   : > { %v3541_v24 = vld [vmem:[#allocation9 + $0x3a4] ss:$16 sps:$4 sm:$0xff]   ;;  %v3544_v42 = vld [vmem:[#allocation9 + $0x3a0] ss:$16 sps:$4 sm:$0xff]  }
 0x1fd   : > { %2205 = vmatpush1.bf16.msra.mxu0 %v3513_v21  ;;  %v3545_v43 = vld [vmem:[#allocation9 + $0x184] ss:$16 sps:$4 sm:$0xff]   ;;  %v3549_v45 = vld [vmem:[#allocation9 + $0x180] ss:$16 sps:$4 sm:$0xff]   ;;  %v3575_v21 = vld [vmem:[#allocation9 + $0xe8] ss:$16 sps:$4 sm:$0xff]  }
 0x1fe   : > { %2248 = vmatpush1.bf16.msra.mxu1 %v3514_v22  ;;  %2206 = vmatprep.subr.bf16.mxu0 %v3515_v25  ;;  %v3547_v44 = vld [vmem:[#allocation9 + $0x384] ss:$16 sps:$4 sm:$0xff]   ;;  %v3550_v46 = vld [vmem:[#allocation9 + $0x380] ss:$16 sps:$4 sm:$0xff]   ;;  %v3578_v22 = vld [vmem:[#allocation9 + $0x2e8] ss:$16 sps:$4 sm:$0xff]  }
 0x1ff   : > { %2249 = vmatprep.subr.bf16.mxu1 %v3517_v26  ;;  %v1385_v47 = vld [vmem:[#allocation2] sm:$0xff]  ;;  %v1387_v50 = vld [vmem:[#allocation2 + $0x10] sm:$0xff]  ;;  %v1391_v51 = vld [vmem:[#allocation2 + $0x38] sm:$0xff] }
 0x200   : > { %v1389_v48 = vld [vmem:[#allocation2 + $0x20] sm:$0xff]  ;;  %v1393_v49 = vmax.f32 %v1385_v47, 0.0  ;;  %v3551_v52 = vld [vmem:[#allocation9 + $0x164] ss:$16 sps:$4 sm:$0xff]   ;;  %v1395_v54 = vmax.f32 %v1387_v50, 0.0  ;;  %v1399_v55 = vmax.f32 %v1391_v51, 0.0 }
 0x201   : > { %2207 = vmatpush1.bf16.msra.mxu0 %v3519_v27  ;;  %v1397_v53 = vmax.f32 %v1389_v48, 0.0  ;;  %v3553_v56 = vld [vmem:[#allocation9 + $0x364] ss:$16 sps:$4 sm:$0xff]   ;;  %v3555_v59 = vld [vmem:[#allocation9 + $0x160] ss:$16 sps:$4 sm:$0xff]  }
 0x202   : > { %2250 = vmatpush1.bf16.msra.mxu1 %v3520_v28  ;;  %2208 = vmatprep.subr.bf16.mxu0 %v3521_v29  ;;  %v4311_v58 = vpack.c.bf16 %v1399_v55, %v1395_v54  ;;  %v3556_v60 = vld [vmem:[#allocation9 + $0x360] ss:$16 sps:$4 sm:$0xff]   ;;  %v3557_v61 = vld [vmem:[#allocation9 + $0x144] ss:$16 sps:$4 sm:$0xff]   ;;  %v3583_v25 = vld [vmem:[#allocation9 + $0xcc] ss:$16 sps:$4 sm:$0xff]  }
 0x203   : > { %2251 = vmatprep.subr.bf16.mxu1 %v3523_v30  ;;  %v4309_v57 = vpack.c.bf16 %v1397_v53, %v1393_v49  ;;  %v3559_v62 = vld [vmem:[#allocation9 + $0x344] ss:$16 sps:$4 sm:$0xff]   ;;  %v3561_v63 = vld [vmem:[#allocation9 + $0x140] ss:$16 sps:$4 sm:$0xff]   ;;  %v3586_v26 = vld [vmem:[#allocation9 + $0x2cc] ss:$16 sps:$4 sm:$0xff]  }
 0x204   : > { %2269 = vmatprep.mubr.bf16.mxu1 %v4311_v58  ;;  %v3562_v0 = vld [vmem:[#allocation9 + $0x340] ss:$16 sps:$4 sm:$0xff]   ;;  %v3563_v1 = vld [vmem:[#allocation9 + $0x124] ss:$16 sps:$4 sm:$0xff]   ;;  %v3581_v27 = vld [vmem:[#allocation9 + $0xc8] ss:$16 sps:$4 sm:$0xff]  }
 0x205   : > { %2209 = vmatpush1.bf16.msra.mxu0 %v3525_v31  ;;  %2226 = vmatprep.mubr.bf16.mxu0 %v4309_v57  ;;  %v3565_v2 = vld [vmem:[#allocation9 + $0x324] ss:$16 sps:$4 sm:$0xff]   ;;  %v3567_v3 = vld [vmem:[#allocation9 + $0x120] ss:$16 sps:$4 sm:$0xff]   ;;  %v3584_v28 = vld [vmem:[#allocation9 + $0x2c8] ss:$16 sps:$4 sm:$0xff]  }
 0x206   : > { %2252 = vmatpush1.bf16.msra.mxu1 %v3526_v32  ;;  %2210 = vmatprep.subr.bf16.mxu0 %v3527_v33  ;;  %v3568_v4 = vld [vmem:[#allocation9 + $0x320] ss:$16 sps:$4 sm:$0xff]   ;;  %v3569_v6 = vld [vmem:[#allocation9 + $0x104] ss:$16 sps:$4 sm:$0xff]   ;;  %v3589_v29 = vld [vmem:[#allocation9 + $0xac] ss:$16 sps:$4 sm:$0xff]  }
 0x207   : > { %2253 = vmatprep.subr.bf16.mxu1 %v3529_v34  ;;  %v1384_v5 = vld [vmem:[#allocation2 + $0x30] sm:$0xff]  ;;  %v1388_v7 = vld [vmem:[#allocation2 + $0x8] sm:$0xff]  ;;  %v1386_v8 = vld [vmem:[#allocation2 + $0x18] sm:$0xff] }
 0x208   : > { %v1390_v9 = vld [vmem:[#allocation2 + $0x28] sm:$0xff]  ;;  %v3573_v11 = vld [vmem:[#allocation9 + $0x100] ss:$16 sps:$4 sm:$0xff]   ;;  %v1392_v13 = vmax.f32 %v1384_v5, 0.0  ;;  %v1396_v14 = vmax.f32 %v1388_v7, 0.0  ;;  %v1394_v15 = vmax.f32 %v1386_v8, 0.0 }
 0x209   : > { %2211 = vmatpush2.bf16.msra.mxu0 %v3531_v35  ;;  %v3571_v10 = vld [vmem:[#allocation9 + $0x304] ss:$16 sps:$4 sm:$0xff]   ;;  %v3574_v12 = vld [vmem:[#allocation9 + $0x300] ss:$16 sps:$4 sm:$0xff]   ;;  %v1398_v16 = vmax.f32 %v1390_v9, 0.0 }
 0x20a   : > { %2254 = vmatpush2.bf16.msra.mxu1 %v3532_v36  ;;  %2212 = vmatprep.subr.bf16.mxu0 %v3533_v37  ;;  %v4315_v19 = vpack.c.bf16 %v1396_v14, %v1392_v13  ;;  %v3592_v30 = vld [vmem:[#allocation9 + $0x2ac] ss:$16 sps:$4 sm:$0xff]   ;;  %v3587_v31 = vld [vmem:[#allocation9 + $0xa8] ss:$16 sps:$4 sm:$0xff]  }
 0x20b   : > { %2255 = vmatprep.subr.bf16.mxu1 %v3535_v38  ;;  %v4317_v20 = vpack.c.bf16 %v1398_v16, %v1394_v15  ;;  %v3590_v32 = vld [vmem:[#allocation9 + $0x2a8] ss:$16 sps:$4 sm:$0xff]   ;;  %v3595_v33 = vld [vmem:[#allocation9 + $0x8c] ss:$16 sps:$4 sm:$0xff]  }
 0x20c   : > { %v3598_v34 = vld [vmem:[#allocation9 + $0x28c] ss:$16 sps:$4 sm:$0xff]   ;;  %v3593_v35 = vld [vmem:[#allocation9 + $0x88] ss:$16 sps:$4 sm:$0xff]  }
 0x20d   : > { %2213 = vmatpush2.bf16.msra.mxu0 %v3537_v39  ;;  %v3596_v36 = vld [vmem:[#allocation9 + $0x288] ss:$16 sps:$4 sm:$0xff]   ;;  %v3601_v37 = vld [vmem:[#allocation9 + $0x6c] ss:$16 sps:$4 sm:$0xff]  }
 0x20e   : > { %2256 = vmatpush2.bf16.msra.mxu1 %v3538_v40  ;;  %2214 = vmatprep.subr.bf16.mxu0 %v3539_v23  ;;  %v3604_v38 = vld [vmem:[#allocation9 + $0x26c] ss:$16 sps:$4 sm:$0xff]   ;;  %v3599_v39 = vld [vmem:[#allocation9 + $0x68] ss:$16 sps:$4 sm:$0xff]  }
 0x20f   : > { %2257 = vmatprep.subr.bf16.mxu1 %v3541_v24  ;;  %v3602_v40 = vld [vmem:[#allocation9 + $0x268] ss:$16 sps:$4 sm:$0xff]   ;;  %v3607_v23 = vld [vmem:[#allocation9 + $0x4c] ss:$16 sps:$4 sm:$0xff]  }
 0x210   : > { %v3610_v24 = vld [vmem:[#allocation9 + $0x24c] ss:$16 sps:$4 sm:$0xff]   ;;  %v3617_v49 = vld [vmem:[#allocation9 + $0x8] ss:$16 sps:$4 sm:$0xff]  }
 0x211   : > { %2215 = vmatpush2.bf16.msra.mxu0 %v3543_v41  ;;  %v3605_v41 = vld [vmem:[#allocation9 + $0x48] ss:$16 sps:$4 sm:$0xff]   ;;  %v3619_v47 = vld [vmem:[#allocation9 + $0xc] ss:$16 sps:$4 sm:$0xff]  }
 0x212   : > { %2258 = vmatpush2.bf16.msra.mxu1 %v3544_v42  ;;  %2216 = vmatprep.subr.bf16.mxu0 %v3545_v43  ;;  %v3608_v42 = vld [vmem:[#allocation9 + $0x248] ss:$16 sps:$4 sm:$0xff]   ;;  %v3613_v43 = vld [vmem:[#allocation9 + $0x2c] ss:$16 sps:$4 sm:$0xff]  }
 0x213   : > { %2259 = vmatprep.subr.bf16.mxu1 %v3547_v44  ;;  %v3616_v44 = vld [vmem:[#allocation9 + $0x22c] ss:$16 sps:$4 sm:$0xff]   ;;  %v3620_v50 = vld [vmem:[#allocation9 + $0x208] ss:$16 sps:$4 sm:$0xff]  }
 0x214   : > { %v3622_v48 = vld [vmem:[#allocation9 + $0x20c] ss:$16 sps:$4 sm:$0xff]   ;;  %v3623_v53 = vld [vmem:[#allocation9 + $0x1e8] ss:$16 sps:$4 sm:$0xff]  }
 0x215   : > { %2217 = vmatpush2.bf16.msra.mxu0 %v3549_v45  ;;  %v3611_v45 = vld [vmem:[#allocation9 + $0x28] ss:$16 sps:$4 sm:$0xff]   ;;  %v3625_v51 = vld [vmem:[#allocation9 + $0x1ec] ss:$16 sps:$4 sm:$0xff]  }
 0x216   : > { %2260 = vmatpush2.bf16.msra.mxu1 %v3550_v46  ;;  %2218 = vmatprep.subr.bf16.mxu0 %v3551_v52  ;;  %v3614_v46 = vld [vmem:[#allocation9 + $0x228] ss:$16 sps:$4 sm:$0xff]   ;;  %v3628_v52 = vld [vmem:[#allocation9 + $0x3ec] ss:$16 sps:$4 sm:$0xff]  }
 0x217   : > { %2261 = vmatprep.subr.bf16.mxu1 %v3553_v56  ;;  %v3626_v54 = vld [vmem:[#allocation9 + $0x3e8] ss:$16 sps:$4 sm:$0xff]   ;;  %v3631_v55 = vld [vmem:[#allocation9 + $0x1cc] ss:$16 sps:$4 sm:$0xff]  }
 0x218   : > { %v3634_v56 = vld [vmem:[#allocation9 + $0x3cc] ss:$16 sps:$4 sm:$0xff]   ;;  %v3647_v5 = vld [vmem:[#allocation9 + $0x168] ss:$16 sps:$4 sm:$0xff]  }
 0x219   : > { %2219 = vmatpush2.bf16.msra.mxu0 %v3555_v59  ;;  %v3637_v59 = vld [vmem:[#allocation9 + $0x1ac] ss:$16 sps:$4 sm:$0xff]   ;;  %v3653_v9 = vld [vmem:[#allocation9 + $0x148] ss:$16 sps:$4 sm:$0xff]  }
 0x21a   : > { %2262 = vmatpush2.bf16.msra.mxu1 %v3556_v60  ;;  %2220 = vmatprep.subr.bf16.mxu0 %v3557_v61  ;;  %v3640_v60 = vld [vmem:[#allocation9 + $0x3ac] ss:$16 sps:$4 sm:$0xff]   ;;  %v3635_v61 = vld [vmem:[#allocation9 + $0x1a8] ss:$16 sps:$4 sm:$0xff]  }
 0x21b   : > { %2263 = vmatprep.subr.bf16.mxu1 %v3559_v62  ;;  %v3638_v62 = vld [vmem:[#allocation9 + $0x3a8] ss:$16 sps:$4 sm:$0xff]   ;;  %v3655_v7 = vld [vmem:[#allocation9 + $0x14c] ss:$16 sps:$4 sm:$0xff]  }
 0x21c   : > { %v3658_v8 = vld [vmem:[#allocation9 + $0x34c] ss:$16 sps:$4 sm:$0xff]   ;;  %v3659_v13 = vld [vmem:[#allocation9 + $0x128] ss:$16 sps:$4 sm:$0xff]  }
 0x21d   : > { %2221 = vmatpush2.bf16.msra.mxu0 %v3561_v63  ;;  %v3643_v63 = vld [vmem:[#allocation9 + $0x18c] ss:$16 sps:$4 sm:$0xff]   ;;  %v3662_v14 = vld [vmem:[#allocation9 + $0x328] ss:$16 sps:$4 sm:$0xff]  }
 0x21e   : > { %2264 = vmatpush2.bf16.msra.mxu1 %v3562_v0  ;;  %2222 = vmatprep.subr.bf16.mxu0 %v3563_v1  ;;  %v3646_v0 = vld [vmem:[#allocation9 + $0x38c] ss:$16 sps:$4 sm:$0xff]   ;;  %v3641_v1 = vld [vmem:[#allocation9 + $0x188] ss:$16 sps:$4 sm:$0xff]  }
 0x21f   : > { %2265 = vmatprep.subr.bf16.mxu1 %v3565_v2  ;;  %v3644_v2 = vld [vmem:[#allocation9 + $0x388] ss:$16 sps:$4 sm:$0xff]   ;;  %v3667_v15 = vld [vmem:[#allocation9 + $0x10c] ss:$16 sps:$4 sm:$0xff]  }
 0x220   : > { %v3670_v16 = vld [vmem:[#allocation9 + $0x30c] ss:$16 sps:$4 sm:$0xff]  }
 0x221   : > { %2223 = vmatpush2.bf16.msra.mxu0 %v3567_v3  ;;  %v3649_v3 = vld [vmem:[#allocation9 + $0x16c] ss:$16 sps:$4 sm:$0xff]  }
 0x222   : > { %2266 = vmatpush2.bf16.msra.mxu1 %v3568_v4  ;;  %2224 = vmatprep.subr.bf16.mxu0 %v3569_v6  ;;  %v3652_v4 = vld [vmem:[#allocation9 + $0x36c] ss:$16 sps:$4 sm:$0xff]   ;;  %v3650_v6 = vld [vmem:[#allocation9 + $0x368] ss:$16 sps:$4 sm:$0xff]  }
 0x223   : > { %2267 = vmatprep.subr.bf16.mxu1 %v3571_v10  ;;  %v3656_v10 = vld [vmem:[#allocation9 + $0x348] ss:$16 sps:$4 sm:$0xff]  }
 0x225   : > { %2225 = vmatpush2.bf16.msra.mxu0 %v3573_v11  ;;  %v3661_v11 = vld [vmem:[#allocation9 + $0x12c] ss:$16 sps:$4 sm:$0xff]  }
 0x226   : > { %2268 = vmatpush2.bf16.msra.mxu1 %v3574_v12  ;;  %2280 = vmatprep.subr.bf16.mxu0 %v3577_v17  ;;  %v3664_v12 = vld [vmem:[#allocation9 + $0x32c] ss:$16 sps:$4 sm:$0xff]   ;;  %v3665_v17 = vld [vmem:[#allocation9 + $0x108] ss:$16 sps:$4 sm:$0xff]  }
 0x227   : > { %2323 = vmatprep.subr.bf16.mxu1 %v3580_v18  ;;  %v3668_v18 = vld [vmem:[#allocation9 + $0x308] ss:$16 sps:$4 sm:$0xff]  }
 0x228   : > { %2227 = vmatmul.mubr.bf16.vlgmr.msra.gmra.mxu0 %v4315_v19 }
 0x229   : > { %2270 = vmatmul.mubr.bf16.vlgmr.msra.gmra.mxu1 %v4317_v20  ;;  %2281 = vmatpush1.bf16.msra.mxu0 %v3575_v21  ;;  %v3671_v21 = vld [vmem:[#allocation11 + $0x78] sm:$0xff]  }
 0x22a   : > { %2324 = vmatpush1.bf16.msra.mxu1 %v3578_v22  ;;  %2282 = vmatprep.subr.bf16.mxu0 %v3583_v25  ;;  %v3672_v22 = vld [vmem:[#allocation11 + $0x38] sm:$0xff]   ;;  %v3673_v25 = vld [vmem:[#allocation11 + $0x70] sm:$0xff]  }
 0x22b   : > { %2325 = vmatprep.subr.bf16.mxu1 %v3586_v26  ;;  %2312 = vmatprep.mubr.bf16.mxu0 %v4309_v57  ;;  %v3629_v57 = vld [vmem:[#allocation9 + $0x1c8] ss:$16 sps:$4 sm:$0xff]   ;;  %v3674_v26 = vld [vmem:[#allocation11 + $0x30] sm:$0xff]  }
 0x22c   : > { %2355 = vmatprep.mubr.bf16.mxu1 %v4311_v58  ;;  %v3632_v58 = vld [vmem:[#allocation9 + $0x3c8] ss:$16 sps:$4 sm:$0xff]  }
 0x22d   : > { %2283 = vmatpush1.bf16.msra.mxu0 %v3581_v27  ;;  %v3675_v27 = vld [vmem:[#allocation11 + $0x68] sm:$0xff]  }
 0x22e   : > { %2326 = vmatpush1.bf16.msra.mxu1 %v3584_v28  ;;  %2284 = vmatprep.subr.bf16.mxu0 %v3589_v29  ;;  %v3676_v28 = vld [vmem:[#allocation11 + $0x28] sm:$0xff]   ;;  %v3677_v29 = vld [vmem:[#allocation11 + $0x60] sm:$0xff]  }
 0x22f   : > { %2327 = vmatprep.subr.bf16.mxu1 %v3592_v30  ;;  %v3678_v30 = vld [vmem:[#allocation11 + $0x20] sm:$0xff]  }
 0x231   : > { %2285 = vmatpush1.bf16.msra.mxu0 %v3587_v31  ;;  %v3679_v31 = vld [vmem:[#allocation11 + $0x58] sm:$0xff]  }
 0x232   : > { %2328 = vmatpush1.bf16.msra.mxu1 %v3590_v32  ;;  %2286 = vmatprep.subr.bf16.mxu0 %v3595_v33  ;;  %v3680_v32 = vld [vmem:[#allocation11 + $0x18] sm:$0xff]   ;;  %v3681_v33 = vld [vmem:[#allocation11 + $0x50] sm:$0xff]  }
 0x233   : > { %2329 = vmatprep.subr.bf16.mxu1 %v3598_v34  ;;  %v3687_v34 = vld [vmem:[#allocation11 + $0xf8] sm:$0xff]  }
 0x235   : > { %2287 = vmatpush1.bf16.msra.mxu0 %v3593_v35  ;;  %v3689_v35 = vld [vmem:[#allocation11 + $0xf0] sm:$0xff]  }
 0x236   : > { %2330 = vmatpush1.bf16.msra.mxu1 %v3596_v36  ;;  %2288 = vmatprep.subr.bf16.mxu0 %v3601_v37  ;;  %v3683_v36 = vld [vmem:[#allocation11 + $0x48] sm:$0xff]   ;;  %v3690_v37 = vld [vmem:[#allocation11 + $0xb0] sm:$0xff]  }
 0x237   : > { %2331 = vmatprep.subr.bf16.mxu1 %v3604_v38  ;;  %v3691_v38 = vld [vmem:[#allocation11 + $0xe8] sm:$0xff]  }
 0x239   : > { %2289 = vmatpush1.bf16.msra.mxu0 %v3599_v39  ;;  %v3684_v39 = vld [vmem:[#allocation11 + $0x8] sm:$0xff]  }
 0x23a   : > { %2332 = vmatpush1.bf16.msra.mxu1 %v3602_v40  ;;  %2290 = vmatprep.subr.bf16.mxu0 %v3607_v23  ;;  %v3685_v40 = vld [vmem:[#allocation11 + $0x40] sm:$0xff]   ;;  %v3692_v23 = vld [vmem:[#allocation11 + $0xa8] sm:$0xff]  }
 0x23b   : > { %2333 = vmatprep.subr.bf16.mxu1 %v3610_v24  ;;  %v3693_v24 = vld [vmem:[#allocation11 + $0xe0] sm:$0xff]  }
 0x23d   : > { %2291 = vmatpush1.bf16.msra.mxu0 %v3605_v41  ;;  %v3686_v41 = vld [vmem:[#allocation11] sm:$0xff]  }
 0x23e   : > { %2334 = vmatpush1.bf16.msra.mxu1 %v3608_v42  ;;  %2292 = vmatprep.subr.bf16.mxu0 %v3613_v43  ;;  %v3694_v42 = vld [vmem:[#allocation11 + $0xa0] sm:$0xff]   ;;  %v3695_v43 = vld [vmem:[#allocation11 + $0xd8] sm:$0xff]  }
 0x23f   : > { %2335 = vmatprep.subr.bf16.mxu1 %v3616_v44  ;;  %v3696_v44 = vld [vmem:[#allocation11 + $0x98] sm:$0xff]  }
 0x241   : > { %2293 = vmatpush1.bf16.msra.mxu0 %v3611_v45  ;;  %v3697_v45 = vld [vmem:[#allocation11 + $0xd0] sm:$0xff]  }
 0x242   : > { %2336 = vmatpush1.bf16.msra.mxu1 %v3614_v46  ;;  %2294 = vmatprep.subr.bf16.mxu0 %v3619_v47  ;;  %v3698_v46 = vld [vmem:[#allocation11 + $0x90] sm:$0xff]   ;;  %v3699_v47 = vld [vmem:[#allocation11 + $0xc8] sm:$0xff]  }
 0x243   : > { %2337 = vmatprep.subr.bf16.mxu1 %v3622_v48  ;;  %v3700_v48 = vld [vmem:[#allocation11 + $0x88] sm:$0xff]  }
 0x245   : > { %2295 = vmatpush1.bf16.msra.mxu0 %v3617_v49  ;;  %v3701_v49 = vld [vmem:[#allocation11 + $0xc0] sm:$0xff]  }
 0x246   : > { %2338 = vmatpush1.bf16.msra.mxu1 %v3620_v50  ;;  %2296 = vmatprep.subr.bf16.mxu0 %v3625_v51  ;;  %v3702_v50 = vld [vmem:[#allocation11 + $0x80] sm:$0xff]   ;;  %v1534_v51 = vlaneseq }
 0x247   : > { %2339 = vmatprep.subr.bf16.mxu1 %v3628_v52 }
 0x248   : > { %v1535_v52 = vshrl.u32 %v1534_v51, 7 }
 0x249   : > { %2297 = vmatpush2.bf16.msra.mxu0 %v3623_v53 }
 0x24a   : > { %2340 = vmatpush2.bf16.msra.mxu1 %v3626_v54  ;;  %2298 = vmatprep.subr.bf16.mxu0 %v3631_v55  ;;  %v1540_v53 = vsub.s32 1, %v1535_v52  ;;  %v1532_v54 = vld [vmem:[%s4360_s4] sm:$0xf]  ;;  %v1536_v55 = vsub.s32 0, %v1535_v52 }
 0x24b   : > { %2341 = vmatprep.subr.bf16.mxu1 %v3634_v56 }
 0x24c   : > { %v1541_v56 = vrot.slane %v1532_v54, %v1540_v53 }
 0x24d   : > { %2299 = vmatpush2.bf16.msra.mxu0 %v3629_v57  ;;  %v1537_v57 = vrot.slane %v1532_v54, %v1536_v55 }
 0x24e   : > { %2342 = vmatpush2.bf16.msra.mxu1 %v3632_v58  ;;  %2300 = vmatprep.subr.bf16.mxu0 %v3637_v59 }
 0x24f   : > { %2343 = vmatprep.subr.bf16.mxu1 %v3640_v60 }
 0x251   : > { %2301 = vmatpush2.bf16.msra.mxu0 %v3635_v61 }
 0x252   : > { %2344 = vmatpush2.bf16.msra.mxu1 %v3638_v62  ;;  %2302 = vmatprep.subr.bf16.mxu0 %v3643_v63 }
 0x253   : > { %2345 = vmatprep.subr.bf16.mxu1 %v3646_v0 }
 0x255   : > { %2303 = vmatpush2.bf16.msra.mxu0 %v3641_v1 }
 0x256   : > { %2346 = vmatpush2.bf16.msra.mxu1 %v3644_v2  ;;  %2304 = vmatprep.subr.bf16.mxu0 %v3649_v3 }
 0x257   : > { %2347 = vmatprep.subr.bf16.mxu1 %v3652_v4 }
 0x259   : > { %2305 = vmatpush2.bf16.msra.mxu0 %v3647_v5 }
 0x25a   : > { %2348 = vmatpush2.bf16.msra.mxu1 %v3650_v6  ;;  %2306 = vmatprep.subr.bf16.mxu0 %v3655_v7 }
 0x25b   : > { %2349 = vmatprep.subr.bf16.mxu1 %v3658_v8 }
 0x25d   : > { %2307 = vmatpush2.bf16.msra.mxu0 %v3653_v9 }
 0x25e   : > { %2350 = vmatpush2.bf16.msra.mxu1 %v3656_v10  ;;  %2308 = vmatprep.subr.bf16.mxu0 %v3661_v11 }
 0x25f   : > { %2351 = vmatprep.subr.bf16.mxu1 %v3664_v12 }
 0x261   : > { %2309 = vmatpush2.bf16.msra.mxu0 %v3659_v13 }
 0x262   : > { %2352 = vmatpush2.bf16.msra.mxu1 %v3662_v14  ;;  %2310 = vmatprep.subr.bf16.mxu0 %v3667_v15 }
 0x263   : > { %2353 = vmatprep.subr.bf16.mxu1 %v3670_v16  ;;  %v1548_v16 = vsub.s32 3, %v1535_v52 }
 0x265   : > { %2311 = vmatpush2.bf16.msra.mxu0 %v3665_v17  ;;  %v1544_v17 = vsub.s32 2, %v1535_v52 }
 0x266   : > { %2354 = vmatpush2.bf16.msra.mxu1 %v3668_v18  ;;  %3152 = vmatprep.subr.bf16.mxu0 %v3671_v21  ;;  %v1549_v18 = vrot.slane %v1532_v54, %v1548_v16 }
 0x267   : > { %3174 = vmatprep.subr.bf16.mxu1 %v3687_v34  ;;  %v1545_v21 = vrot.slane %v1532_v54, %v1544_v17 }
 0x268   : > { %2313 = vmatmul.mubr.bf16.vlgmr.msra.gmra.mxu0 %v4315_v19  ;;  %v3688_v19 = vld [vmem:[#allocation11 + $0xb8] sm:$0xff]  }
 0x269   : > { %2356 = vmatmul.mubr.bf16.vlgmr.msra.gmra.mxu1 %v4317_v20  ;;  %3153 = vmatpush3.bf16.msra.mxu0 %v3672_v22  ;;  %v3682_v20 = vld [vmem:[#allocation11 + $0x10] sm:$0xff]  }
 0x26a   : > { %3154 = vmatprep.subr.bf16.mxu0 %v3673_v25  ;;  %3175 = vmatpush3.bf16.msra.mxu1 %v3688_v19 }
 0x26b   : > { %3176 = vmatprep.subr.bf16.mxu1 %v3689_v35 }
 0x26d   : > { %3155 = vmatpush3.bf16.msra.mxu0 %v3674_v26 }
 0x26e   : > { %3156 = vmatprep.subr.bf16.mxu0 %v3675_v27  ;;  %3177 = vmatpush3.bf16.msra.mxu1 %v3690_v37 }
 0x26f   : > { %3178 = vmatprep.subr.bf16.mxu1 %v3691_v38 }
 0x271   : > { %3157 = vmatpush3.bf16.msra.mxu0 %v3676_v28 }
 0x272   : > { %3158 = vmatprep.subr.bf16.mxu0 %v3677_v29  ;;  %3179 = vmatpush3.bf16.msra.mxu1 %v3692_v23 }
 0x273   : > { %3180 = vmatprep.subr.bf16.mxu1 %v3693_v24 }
 0x275   : > { %3159 = vmatpush3.bf16.msra.mxu0 %v3678_v30 }
 0x276   : > { %3160 = vmatprep.subr.bf16.mxu0 %v3679_v31  ;;  %3181 = vmatpush3.bf16.msra.mxu1 %v3694_v42 }
 0x277   : > { %3182 = vmatprep.subr.bf16.mxu1 %v3695_v43 }
 0x279   : > { %3161 = vmatpush3.bf16.msra.mxu0 %v3680_v32 }
 0x27a   : > { %3162 = vmatprep.subr.bf16.mxu0 %v3681_v33  ;;  %3183 = vmatpush3.bf16.msra.mxu1 %v3696_v44 }
 0x27b   : > { %3184 = vmatprep.subr.bf16.mxu1 %v3697_v45 }
 0x27d   : > { %3163 = vmatpush3.bf16.msra.mxu0 %v3682_v20 }
 0x27e   : > { %3164 = vmatprep.subr.bf16.mxu0 %v3683_v36  ;;  %3185 = vmatpush3.bf16.msra.mxu1 %v3698_v46  ;;  %v3112_v46 = vld [vmem:[%s4362_s6] ss:$0 sm:$0xff] }
 0x27f   : > { %3186 = vmatprep.subr.bf16.mxu1 %v3699_v47 }
 0x281   : > { %3165 = vmatpush3.bf16.msra.mxu0 %v3684_v39 }
 0x282   : > { %3166 = vmatprep.subr.bf16.mxu0 %v3685_v40  ;;  %3187 = vmatpush3.bf16.msra.mxu1 %v3700_v48 }
 0x283   : > { %3188 = vmatprep.subr.bf16.mxu1 %v3701_v49 }
 0x285   : > { %3167 = vmatpush3.bf16.msra.mxu0 %v3686_v41 }
 0x286   : > { %3189 = vmatpush3.bf16.msra.mxu1 %v3702_v50 }
 0x2e8   : > { %v2228_v58 = vpop.f32.mrf.mxu0 }
 0x2e9   : > { %v2271_v59 = vpop.f32.mrf.mxu1  ;;  %v2229_v63 = vadd.f32 %v2228_v58, %v1537_v57 }
 0x2ea   : > { %v2230_v60 = vpop.f32.mrf.mxu0 }
 0x2eb   : > { %v2273_v61 = vpop.f32.mrf.mxu1  ;;  %v2231_v62 = vadd.f32 %v2230_v60, %v1541_v56  ;;  %v2272_v7 = vadd.f32 %v2271_v59, %v2229_v63 }
 0x2ec   : > { %v2232_v0 = vpop.f32.mrf.mxu0 }
 0x2ed   : > { %v2275_v1 = vpop.f32.mrf.mxu1  ;;  %v2233_v2 = vadd.f32 %v2232_v0, %v1537_v57  ;;  %v2274_v4 = vadd.f32 %v2273_v61, %v2231_v62  ;;  %v2366_v13 = vmax.f32 %v2272_v7, 0.0 }
 0x2ee   : > { %v2234_v3 = vpop.f32.mrf.mxu0 }
 0x2ef   : > { %v2276_v5 = vadd.f32 %v2275_v1, %v2233_v2  ;;  %v2235_v6 = vadd.f32 %v2234_v3, %v1541_v56  ;;  %v2277_v8 = vpop.f32.mrf.mxu1  ;;  %v2367_v11 = vmax.f32 %v2274_v4, 0.0 }
 0x2f1   : > { %v2278_v9 = vadd.f32 %v2277_v8, %v2235_v6  ;;  %v2370_v10 = vmax.f32 %v2276_v5, 0.0 }
 0x2f3   : > { %v2371_v12 = vmax.f32 %v2278_v9, 0.0  ;;  %v2374_v15 = vpack.c.bf16 %v2370_v10, %v2366_v13 }
 0x2f5   : > { %v2375_v14 = vpack.c.bf16 %v2371_v12, %v2367_v11 }
 0x2f7   : > { %2673 = vmatprep.mubr.bf16.mxu0 %v2375_v14 }
 0x2f8   : > { %2674 = vmatmul.mubr.bf16.vlgmr.msra.gmra.mxu0 %v2374_v15 }
 0x328   : > { %v2314_v22 = vpop.f32.mrf.mxu0 }
 0x329   : > { %v2357_v25 = vpop.f32.mrf.mxu1  ;;  %v2315_v29 = vadd.f32 %v2314_v22, %v1545_v21 }
 0x32a   : > { %v2316_v26 = vpop.f32.mrf.mxu0 }
 0x32b   : > { %v2359_v27 = vpop.f32.mrf.mxu1  ;;  %v2317_v28 = vadd.f32 %v2316_v26, %v1549_v18  ;;  %v2358_v20 = vadd.f32 %v2357_v25, %v2315_v29 }
 0x32c   : > { %v2318_v30 = vpop.f32.mrf.mxu0 }
 0x32d   : > { %v2361_v31 = vpop.f32.mrf.mxu1  ;;  %v2319_v32 = vadd.f32 %v2318_v30, %v1545_v21  ;;  %v2360_v34 = vadd.f32 %v2359_v27, %v2317_v28  ;;  %v2368_v23 = vmax.f32 %v2358_v20, 0.0 }
 0x32e   : > { %v2320_v33 = vpop.f32.mrf.mxu0 }
 0x32f   : > { %v2362_v19 = vadd.f32 %v2361_v31, %v2319_v32  ;;  %v2321_v35 = vadd.f32 %v2320_v33, %v1549_v18  ;;  %v2363_v36 = vpop.f32.mrf.mxu1  ;;  %v2369_v39 = vmax.f32 %v2360_v34, 0.0 }
 0x331   : > { %v2364_v37 = vadd.f32 %v2363_v36, %v2321_v35  ;;  %v2372_v38 = vmax.f32 %v2362_v19, 0.0 }
 0x333   : > { %v2373_v40 = vmax.f32 %v2364_v37, 0.0  ;;  %v2376_v41 = vpack.c.bf16 %v2372_v38, %v2368_v23 }
 0x335   : > { %v2377_v24 = vpack.c.bf16 %v2373_v40, %v2369_v39 }
 0x337   : > { %2714 = vmatprep.mubr.bf16.mxu1 %v2377_v24 }
 0x338   : > { %2715 = vmatmul.mubr.bf16.vlgmr.msra.gmra.mxu1 %v2376_v41 }
 0x3b8   : > { %v3168_v42 = vpop.f32.mrf.mxu0 }
 0x3ba   : > { %v3169_v43 = vpop.f32.mrf.mxu0 }
 0x3bb   : > { %v3170_v45 = vadd.f32 %v3169_v43, %v3168_v42 }
 0x3bc   : > { %v3171_v44 = vpop.f32.mrf.mxu0 }
 0x3bd   : > { %v2676_v50 = vadd.f32 %v3170_v45, %v3112_v46 }
 0x3be   : > { %v3172_v47 = vpop.f32.mrf.mxu0 }
 0x3bf   : > { %v3173_v51 = vadd.f32 %v3172_v47, %v3171_v44 }
 0x3c1   : > { %v2679_v56 = vadd.f32 %v3173_v51, %v3112_v46 }
 0x3f8   : > { %v3190_v48 = vpop.f32.mrf.mxu1 }
 0x3fa   : > { %v3191_v49 = vpop.f32.mrf.mxu1 }
 0x3fb   : > { %v3192_v52 = vadd.f32 %v3191_v49, %v3190_v48 }
 0x3fc   : > { %v3193_v53 = vpop.f32.mrf.mxu1 }
 0x3fd   : > { %v2717_v54 = vadd.f32 %v3192_v52, %v2676_v50 }
 0x3fe   : > { %v3194_v55 = vpop.f32.mrf.mxu1 }
 0x3ff   : > { %2723 = vst [vmem:[#allocation12] sm:$0xff] %v2717_v54  ;;  %v3195_v57 = vadd.f32 %v3194_v55, %v3193_v53 }
 0x401   : > { %v2720_v58 = vadd.f32 %v3195_v57, %v2679_v56 }
 0x403   : > { %2724 = vst [vmem:[#allocation12 + $0x8] sm:$0xff] %v2720_v58 }
 0x404 PF: > { %p3240_p6 = scmp.eq.s32.totalorder %s3987_s28, 1  ;;  %s3925_s24 = smov [#allocation12]  }
 0x405   : > { %s2731_s14 = sshll.u32 %s3925_s24, 4  ;;  %s2732_s14 = int_to_ptr.vmem [resolvable:$true] %s2731_s14 }
 0x406   : > { %s3837_s16 = scalar_lea.vmem %s2732_s14, 256  ;;  %p3844_p12 = scmp.lt.s32.totalorder %s2732_s14, %s2732_s14 }
 0x407   : > { %p3838_p7 = scmp.ne.s32.totalorder %s2732_s14, %s3837_s16  ;;  %p3845_p2 = scmp.lt.s32.totalorder %s3837_s16, %s3837_s16 }
 0x409   : > { %p3839_p1 = pnand %p3838_p7, %p3240_p6  ;;  %p3846_p4 = por %p3845_p2, %p3844_p12 }
 0x40b   : > { %p3840_p13 = pneg %p3839_p1 }
 0x40d   : > { %p3847_p3 = pnand %p3846_p4, %p3840_p13 }
 0x40f   : > { %3850 = shalt.err (!%p3847_p3)
}
 0x410   : > { %s3926_s10 = smov 128   ;;  %s3927_s15 = smov 8  }
 0x411   : > { %3213 = dma.vmem_to_hbm [thread:$0]  (%p3240_p6), %s2732_s14, 256, %s4363_s7, [#allocation5], %s3926_s10, %s3926_s10, %s3927_s15  }
 0x412   : > { %3894 = dma.done.wait (%p3240_p6), [#allocation5], 256  }
 0x413   : > { %3896 = vsyncadd (%p3240_p6), [#allocation5], 4294967040 }
 0x414 PF: > { %p22_p11 = scmp.ge.s32.totalorder %s3990_s29, 4   ;;  %s4391_s24 = smov %s3903_s25 }
 0x415   : > { %s4392_s25 = smov %s3907_s26  ;;  %s4393_s26 = smov %s4000_s9 }
 0x416   : > { %s4394_s27 = smov %s3990_s29  ;;  %24 = sbr.rel (!%p22_p11) target bundleno = 11 (0xb), region = 118 }
 0x41b   :  { %2747 = vsyncpa [#allocation4], 1 }
 0x41c   :  { %2749 = vsyncpa [#allocation4 + $0x1], 1 }
 0x41d   :  { %2750 = vsyncpa [#allocation7], 1 }
 0x41e   :  { %2752 = vsyncpa [#allocation7 + $0x1], 1 }
 0x41f   :  { %2753 = vsyncpa [#allocation10], 1 }
 0x420   :  { %2754 = vsyncpa [#allocation5], 1 }
 0x421   :  { %2756 = vsyncpa [#allocation5 + $0x1], 1 }

</bundles_post_ra>
